<compile_context>
chip_gen: v5e
topology: v5e:2x2
jax: 0.10.0
libtpu: 0.0.40
codegen_flags: <defaults>
</compile_context>

<pallas_src>
import functools

import jax
import jax.numpy as jnp
from jax.experimental import pallas as pl
from jax.experimental.pallas import tpu as pltpu


# ----------------------------------------------------------------------------
# Fully fused Pallas kernel: all layers, both directions, final FC.
# ----------------------------------------------------------------------------
def _bilstm_fused_kernel(x_ref, wih_ref, whh_ref, b_ref, fcw_ref, fcb_ref,
                         out_ref, *, hidden, num_layers, seq_len, batch,
                         input_size):
    H = hidden
    H4 = 4 * H
    T = seq_len
    B = batch

    # Hoisted once (JAX does not CSE broadcast/iota): lane mask for the g gate.
    lane = jax.lax.broadcasted_iota(jnp.int32, (B, H4), 1)
    g_lanes = (lane >= 2 * H) & (lane < 3 * H)

    def cell_step(h, c, xw_t, whh):
        # Input projection + bias already hoisted into xw_t.
        gates = xw_t + jnp.dot(h, whh, preferred_element_type=jnp.float32)
        # One full-vreg sigmoid + one full-vreg tanh, select g's lanes.
        act = jnp.where(g_lanes, jnp.tanh(gates), jax.nn.sigmoid(gates))
        i = act[:, 0 * H:1 * H]
        f = act[:, 1 * H:2 * H]
        g = act[:, 2 * H:3 * H]
        o = act[:, 3 * H:4 * H]
        c = f * c + i * g
        h = o * jnp.tanh(c)
        return h, c

    def bidi_recurrence(xw_f, xw_b, whh_f, whh_b):
        # Interleave the two independent chains (fwd step t, bwd step T-1-t)
        # so their serial MXU/EUP/VPU latencies overlap.
        h_f = jnp.zeros((B, H), jnp.float32)
        c_f = jnp.zeros((B, H), jnp.float32)
        h_b = jnp.zeros((B, H), jnp.float32)
        c_b = jnp.zeros((B, H), jnp.float32)
        out_f = [None] * T
        out_b = [None] * T
        # TODO(synk): for large T/H switch to lax.fori_loop + VMEM scratch for
        # the per-layer outputs to bound live ranges (fully unrolled is fine at T=8).
        for s in range(T):
            tf, tb = s, T - 1 - s
            h_f, c_f = cell_step(h_f, c_f, xw_f[tf], whh_f)
            h_b, c_b = cell_step(h_b, c_b, xw_b[tb], whh_b)
            out_f[tf] = h_f
            out_b[tb] = h_b
        return out_f, out_b

    def split_steps(xw_all):
        # (T*B, 4H) -> T slabs of (B, 4H): static sublane slices, all
        # independent of the recurrent chain (scheduler can hoist/overlap).
        return [xw_all[t * B:(t + 1) * B, :] for t in range(T)]

    x2d = x_ref[...]                                   # (T*B, D), time-major
    out_f = out_b = None
    for layer in range(num_layers):
        i_f, i_b = 2 * layer, 2 * layer + 1
        b_f = b_ref[i_f]                               # (1, 4H) combined bias
        b_b = b_ref[i_b]
        whh_f = whh_ref[i_f]                           # (H, 4H)
        whh_b = whh_ref[i_b]
        w_f = wih_ref[i_f]                             # (P, 4H), P = max(D, 2H)
        w_b = wih_ref[i_b]

        if layer == 0:
            xw_f_all = jnp.dot(x2d, w_f[:input_size, :],
                               preferred_element_type=jnp.float32) + b_f
            xw_b_all = jnp.dot(x2d, w_b[:input_size, :],
                               preferred_element_type=jnp.float32) + b_b
        else:
            # Input of this layer is concat(out_f, out_b) per timestep; instead
            # of 2T lane-concats, split Wih into its fwd/bwd row blocks and do
            # batched matmuls over all timesteps at once.
            prev_f = jnp.concatenate(out_f, axis=0)    # (T*B, H)
            prev_b = jnp.concatenate(out_b, axis=0)    # (T*B, H)
            xw_f_all = (jnp.dot(prev_f, w_f[0:H, :],
                                preferred_element_type=jnp.float32)
                        + jnp.dot(prev_b, w_f[H:2 * H, :],
                                  preferred_element_type=jnp.float32) + b_f)
            xw_b_all = (jnp.dot(prev_f, w_b[0:H, :],
                                preferred_element_type=jnp.float32)
                        + jnp.dot(prev_b, w_b[H:2 * H, :],
                                  preferred_element_type=jnp.float32) + b_b)

        out_f, out_b = bidi_recurrence(split_steps(xw_f_all),
                                       split_steps(xw_b_all), whh_f, whh_b)

    # out[:, -1, :] == concat(h_fwd(T-1), h_bwd(T-1)); avoid the concat by
    # splitting the FC weight into its fwd/bwd row blocks.
    fcw = fcw_ref[...]                                 # (2H, 2)
    last_f = out_f[T - 1]
    last_b = out_b[T - 1]
    logits = (jnp.dot(last_f, fcw[0:H, :], preferred_element_type=jnp.float32)
              + jnp.dot(last_b, fcw[H:2 * H, :],
                        preferred_element_type=jnp.float32)
              + fcb_ref[...])
    out_ref[...] = logits.astype(out_ref.dtype)


def bilstm_forward(x, params, hidden_size, num_layers):
    """x: (B, T, input_size) batch_first, like the PyTorch module. Returns (B, 2)."""
    B, T, D = x.shape
    H = hidden_size
    pad_rows = max(D, 2 * H)

    # Pack all per-(layer, direction) weights into three stacked arrays so the
    # kernel prologue is a handful of contiguous DMAs instead of 11.
    wih_list, whh_list, b_list = [], [], []
    for layer in range(num_layers):
        for d in range(2):                             # 0 = forward, 1 = backward
            p = params["layers"][layer][d]
            w = p["wih_t"]                             # (D_in, 4H)
            w = jnp.pad(w, ((0, pad_rows - w.shape[0]), (0, 0)))
            wih_list.append(w)
            whh_list.append(p["whh_t"])                # (H, 4H)
            b_list.append(p["b"])                      # (1, 4H)
    wih = jnp.stack(wih_list)                          # (2L, P, 4H)
    whh = jnp.stack(whh_list)                          # (2L, H, 4H)
    bias = jnp.stack(b_list)                           # (2L, 1, 4H)

    # Time-major, flattened over (T, B): the hoisted input projections become a
    # single (T*B, D_in) x (D_in, 4H) matmul per layer/direction.
    x2d = jnp.transpose(x, (1, 0, 2)).reshape(T * B, D).astype(jnp.float32)

    kernel = functools.partial(
        _bilstm_fused_kernel, hidden=H, num_layers=num_layers, seq_len=T,
        batch=B, input_size=D)
    operands = (x2d, wih, whh, bias, params["fc_w_t"], params["fc_b"])

    return pl.pallas_call(
        kernel,
        out_shape=jax.ShapeDtypeStruct((B, 2), jnp.float32),
        in_specs=[pl.BlockSpec(memory_space=pltpu.MemorySpace.VMEM)
                  for _ in operands],
        out_specs=pl.BlockSpec(memory_space=pltpu.MemorySpace.VMEM),
    )(*operands)


# ----------------------------------------------------------------------------
# Parameter init (deterministic, mimics PyTorch's U(-1/sqrt(H), 1/sqrt(H)))
# ----------------------------------------------------------------------------
def init_bilstm_params(key, input_size, hidden_size, num_layers):
    k = 1.0 / jnp.sqrt(hidden_size)
    params = {"layers": []}
    for layer in range(num_layers):
        in_size = input_size if layer == 0 else 2 * hidden_size
        dirs = []
        for _direction in range(2):                    # 0 = forward, 1 = backward
            key, k1, k2, k3, k4 = jax.random.split(key, 5)
            w_ih = jax.random.uniform(k1, (4 * hidden_size, in_size),
                                      jnp.float32, -k, k)
            w_hh = jax.random.uniform(k2, (4 * hidden_size, hidden_size),
                                      jnp.float32, -k, k)
            b_ih = jax.random.uniform(k3, (4 * hidden_size,), jnp.float32, -k, k)
            b_hh = jax.random.uniform(k4, (4 * hidden_size,), jnp.float32, -k, k)
            dirs.append({
                "wih_t": w_ih.T,                       # (in, 4H)
                "whh_t": w_hh.T,                       # (H, 4H)
                "b": (b_ih + b_hh).reshape(1, 4 * hidden_size),
            })
        params["layers"].append(dirs)
    key, kw, kb = jax.random.split(key, 3)
    kf = 1.0 / jnp.sqrt(2 * hidden_size)
    w_fc = jax.random.uniform(kw, (2, 2 * hidden_size), jnp.float32, -kf, kf)
    b_fc = jax.random.uniform(kb, (2,), jnp.float32, -kf, kf)
    params["fc_w_t"] = w_fc.T                          # (2H, 2)
    params["fc_b"] = b_fc.reshape(1, 2)
    return params


# ----------------------------------------------------------------------------
# Pure-JAX reference (unfused weights, per-step math -> independently checks the
# hoisting / weight-splitting / whole-vreg activation tricks)
# ----------------------------------------------------------------------------
def _ref_forward(x, params, hidden_size, num_layers):
    H = hidden_size

    def run_dir(seq, p):  # seq: (T, B, D)
        B = seq.shape[1]
        h = jnp.zeros((B, H), jnp.float32)
        c = jnp.zeros((B, H), jnp.float32)
        outs = []
        for t in range(seq.shape[0]):
            g = seq[t] @ p["wih_t"] + h @ p["whh_t"] + p["b"]
            i = jax.nn.sigmoid(g[:, 0 * H:1 * H])
            f = jax.nn.sigmoid(g[:, 1 * H:2 * H])
            gg = jnp.tanh(g[:, 2 * H:3 * H])
            o = jax.nn.sigmoid(g[:, 3 * H:4 * H])
            c = f * c + i * gg
            h = o * jnp.tanh(c)
            outs.append(h)
        return jnp.stack(outs, axis=0)

    x_tm = jnp.transpose(x, (1, 0, 2)).astype(jnp.float32)
    for layer in range(num_layers):
        fwd, bwd = params["layers"][layer]
        out_f = run_dir(x_tm, fwd)
        out_b = run_dir(x_tm[::-1], bwd)[::-1]
        x_tm = jnp.concatenate([out_f, out_b], axis=-1)
    return x_tm[-1] @ params["fc_w_t"] + params["fc_b"]


# ----------------------------------------------------------------------------
if __name__ == "__main__":
    # Small, module-consistent shapes.
    B, T = 2, 8
    input_size, hidden_size, num_layers = 16, 32, 2
    # (num_classes / lstm_dropout exist in __init__ but the forward pass's fc
    #  is hard-coded to 2 outputs and the LSTM is built without dropout.)

    key = jax.random.PRNGKey(0)
    kx, kp = jax.random.split(key)
    x = jax.random.normal(kx, (B, T, input_size), jnp.float32)
    params = init_bilstm_params(kp, input_size, hidden_size, num_layers)

    fwd = jax.jit(functools.partial(bilstm_forward, hidden_size=hidden_size,
                                    num_layers=num_layers))
    out = fwd(x, params)
    out = jax.block_until_ready(out)
    assert out.shape == (B, 2), out.shape

    ref = _ref_forward(x, params, hidden_size, num_layers)
    assert jnp.allclose(out, ref, atol=1e-4, rtol=1e-4), (out, ref)

    print("KERNEL_OK")
</pallas_src>

<mosaic_0001>
module attributes {stable_mosaic.version = 11 : i64} {
  func.func @_bilstm_fused_kernel(%arg0: memref<16x16xf32, #tpu.memory_space<vmem>>, %arg1: memref<4x64x128xf32, #tpu.memory_space<vmem>>, %arg2: memref<4x32x128xf32, #tpu.memory_space<vmem>>, %arg3: memref<4x1x128xf32, #tpu.memory_space<vmem>>, %arg4: memref<64x2xf32, #tpu.memory_space<vmem>>, %arg5: memref<1x2xf32, #tpu.memory_space<vmem>>, %arg6: memref<2x2xf32, #tpu.memory_space<vmem>>) attributes {dimension_semantics = [], scalar_prefetch = 0 : i64, scratch_operands = 0 : i64, tpu.core_type = #tpu.core_type<tc>} {
    %0 = tpu.iota {dimensions = array<i32: 1>} : vector<2x128xi32>
    %c64_i32 = arith.constant 64 : i32
    %1 = vector.broadcast %c64_i32 : i32 to vector<2x128xi32>
    %2 = arith.cmpi sge, %0, %1 : vector<2x128xi32>
    %c96_i32 = arith.constant 96 : i32
    %3 = vector.broadcast %c96_i32 : i32 to vector<2x128xi32>
    %4 = arith.cmpi slt, %0, %3 : vector<2x128xi32>
    %5 = arith.andi %2, %4 : vector<2x128xi1>
    %c0 = arith.constant 0 : index
    %c0_0 = arith.constant 0 : index
    %6 = vector.load %arg0[%c0, %c0_0] : memref<16x16xf32, #tpu.memory_space<vmem>>, vector<16x16xf32>
    %c0_1 = arith.constant 0 : index
    %c0_2 = arith.constant 0 : index
    %c0_3 = arith.constant 0 : index
    %7 = vector.load %arg3[%c0_1, %c0_2, %c0_3] : memref<4x1x128xf32, #tpu.memory_space<vmem>>, vector<1x1x128xf32>
    %8 = vector.shape_cast %7 : vector<1x1x128xf32> to vector<1x128xf32>
    %c1 = arith.constant 1 : index
    %c0_4 = arith.constant 0 : index
    %c0_5 = arith.constant 0 : index
    %9 = vector.load %arg3[%c1, %c0_4, %c0_5] : memref<4x1x128xf32, #tpu.memory_space<vmem>>, vector<1x1x128xf32>
    %10 = vector.shape_cast %9 : vector<1x1x128xf32> to vector<1x128xf32>
    %c0_6 = arith.constant 0 : index
    %c0_7 = arith.constant 0 : index
    %c0_8 = arith.constant 0 : index
    %11 = vector.load %arg2[%c0_6, %c0_7, %c0_8] : memref<4x32x128xf32, #tpu.memory_space<vmem>>, vector<1x32x128xf32>
    %12 = vector.shape_cast %11 : vector<1x32x128xf32> to vector<32x128xf32>
    %c1_9 = arith.constant 1 : index
    %c0_10 = arith.constant 0 : index
    %c0_11 = arith.constant 0 : index
    %13 = vector.load %arg2[%c1_9, %c0_10, %c0_11] : memref<4x32x128xf32, #tpu.memory_space<vmem>>, vector<1x32x128xf32>
    %14 = vector.shape_cast %13 : vector<1x32x128xf32> to vector<32x128xf32>
    %c0_12 = arith.constant 0 : index
    %c0_13 = arith.constant 0 : index
    %c0_14 = arith.constant 0 : index
    %15 = vector.load %arg1[%c0_12, %c0_13, %c0_14] : memref<4x64x128xf32, #tpu.memory_space<vmem>>, vector<1x64x128xf32>
    %16 = vector.shape_cast %15 : vector<1x64x128xf32> to vector<64x128xf32>
    %c1_15 = arith.constant 1 : index
    %c0_16 = arith.constant 0 : index
    %c0_17 = arith.constant 0 : index
    %17 = vector.load %arg1[%c1_15, %c0_16, %c0_17] : memref<4x64x128xf32, #tpu.memory_space<vmem>>, vector<1x64x128xf32>
    %18 = vector.shape_cast %17 : vector<1x64x128xf32> to vector<64x128xf32>
    %19 = vector.extract_strided_slice %16 {offsets = [0, 0], sizes = [16, 128], strides = [1, 1]} : vector<64x128xf32> to vector<16x128xf32>
    %cst = arith.constant dense<0.000000e+00> : vector<16x128xf32>
    %20 = tpu.matmul %6, %19, %cst {dimension_numbers = #tpu.dot_dimension_numbers<[1], [0], [0], [1], [0, 0, 1, 1], [], []>} : vector<16x16xf32>, vector<16x128xf32>, vector<16x128xf32> -> vector<16x128xf32>
    %21 = vector.broadcast %8 : vector<1x128xf32> to vector<16x128xf32>
    %22 = arith.addf %20, %21 : vector<16x128xf32>
    %23 = vector.extract_strided_slice %18 {offsets = [0, 0], sizes = [16, 128], strides = [1, 1]} : vector<64x128xf32> to vector<16x128xf32>
    %cst_18 = arith.constant dense<0.000000e+00> : vector<16x128xf32>
    %24 = tpu.matmul %6, %23, %cst_18 {dimension_numbers = #tpu.dot_dimension_numbers<[1], [0], [0], [1], [0, 0, 1, 1], [], []>} : vector<16x16xf32>, vector<16x128xf32>, vector<16x128xf32> -> vector<16x128xf32>
    %25 = vector.broadcast %10 : vector<1x128xf32> to vector<16x128xf32>
    %26 = arith.addf %24, %25 : vector<16x128xf32>
    %27 = vector.extract_strided_slice %22 {offsets = [0, 0], sizes = [2, 128], strides = [1, 1]} : vector<16x128xf32> to vector<2x128xf32>
    %28 = vector.extract_strided_slice %22 {offsets = [2, 0], sizes = [2, 128], strides = [1, 1]} : vector<16x128xf32> to vector<2x128xf32>
    %29 = vector.extract_strided_slice %22 {offsets = [4, 0], sizes = [2, 128], strides = [1, 1]} : vector<16x128xf32> to vector<2x128xf32>
    %30 = vector.extract_strided_slice %22 {offsets = [6, 0], sizes = [2, 128], strides = [1, 1]} : vector<16x128xf32> to vector<2x128xf32>
    %31 = vector.extract_strided_slice %22 {offsets = [8, 0], sizes = [2, 128], strides = [1, 1]} : vector<16x128xf32> to vector<2x128xf32>
    %32 = vector.extract_strided_slice %22 {offsets = [10, 0], sizes = [2, 128], strides = [1, 1]} : vector<16x128xf32> to vector<2x128xf32>
    %33 = vector.extract_strided_slice %22 {offsets = [12, 0], sizes = [2, 128], strides = [1, 1]} : vector<16x128xf32> to vector<2x128xf32>
    %34 = vector.extract_strided_slice %22 {offsets = [14, 0], sizes = [2, 128], strides = [1, 1]} : vector<16x128xf32> to vector<2x128xf32>
    %35 = vector.extract_strided_slice %26 {offsets = [0, 0], sizes = [2, 128], strides = [1, 1]} : vector<16x128xf32> to vector<2x128xf32>
    %36 = vector.extract_strided_slice %26 {offsets = [2, 0], sizes = [2, 128], strides = [1, 1]} : vector<16x128xf32> to vector<2x128xf32>
    %37 = vector.extract_strided_slice %26 {offsets = [4, 0], sizes = [2, 128], strides = [1, 1]} : vector<16x128xf32> to vector<2x128xf32>
    %38 = vector.extract_strided_slice %26 {offsets = [6, 0], sizes = [2, 128], strides = [1, 1]} : vector<16x128xf32> to vector<2x128xf32>
    %39 = vector.extract_strided_slice %26 {offsets = [8, 0], sizes = [2, 128], strides = [1, 1]} : vector<16x128xf32> to vector<2x128xf32>
    %40 = vector.extract_strided_slice %26 {offsets = [10, 0], sizes = [2, 128], strides = [1, 1]} : vector<16x128xf32> to vector<2x128xf32>
    %41 = vector.extract_strided_slice %26 {offsets = [12, 0], sizes = [2, 128], strides = [1, 1]} : vector<16x128xf32> to vector<2x128xf32>
    %42 = vector.extract_strided_slice %26 {offsets = [14, 0], sizes = [2, 128], strides = [1, 1]} : vector<16x128xf32> to vector<2x128xf32>
    %cst_19 = arith.constant 0.000000e+00 : f32
    %43 = vector.broadcast %cst_19 : f32 to vector<2x32xf32>
    %cst_20 = arith.constant 0.000000e+00 : f32
    %44 = vector.broadcast %cst_20 : f32 to vector<2x32xf32>
    %cst_21 = arith.constant 0.000000e+00 : f32
    %45 = vector.broadcast %cst_21 : f32 to vector<2x32xf32>
    %cst_22 = arith.constant 0.000000e+00 : f32
    %46 = vector.broadcast %cst_22 : f32 to vector<2x32xf32>
    %cst_23 = arith.constant dense<0.000000e+00> : vector<2x128xf32>
    %47 = tpu.matmul %43, %12, %cst_23 {dimension_numbers = #tpu.dot_dimension_numbers<[1], [0], [0], [1], [0, 0, 1, 1], [], []>} : vector<2x32xf32>, vector<32x128xf32>, vector<2x128xf32> -> vector<2x128xf32>
    %48 = arith.addf %27, %47 : vector<2x128xf32>
    %49 = math.tanh %48 : vector<2x128xf32>
    %50 = arith.negf %48 : vector<2x128xf32>
    %51 = math.exp %50 : vector<2x128xf32>
    %cst_24 = arith.constant 1.000000e+00 : f32
    %52 = vector.broadcast %cst_24 : f32 to vector<2x128xf32>
    %53 = arith.addf %52, %51 : vector<2x128xf32>
    %54 = arith.divf %52, %53 : vector<2x128xf32>
    %55 = arith.select %5, %49, %54 : vector<2x128xi1>, vector<2x128xf32>
    %56 = vector.extract_strided_slice %55 {offsets = [0, 0], sizes = [2, 32], strides = [1, 1]} : vector<2x128xf32> to vector<2x32xf32>
    %57 = vector.extract_strided_slice %55 {offsets = [0, 32], sizes = [2, 32], strides = [1, 1]} : vector<2x128xf32> to vector<2x32xf32>
    %58 = vector.extract_strided_slice %55 {offsets = [0, 64], sizes = [2, 32], strides = [1, 1]} : vector<2x128xf32> to vector<2x32xf32>
    %59 = vector.extract_strided_slice %55 {offsets = [0, 96], sizes = [2, 32], strides = [1, 1]} : vector<2x128xf32> to vector<2x32xf32>
    %60 = arith.mulf %57, %44 : vector<2x32xf32>
    %61 = arith.mulf %56, %58 : vector<2x32xf32>
    %62 = arith.addf %60, %61 : vector<2x32xf32>
    %63 = math.tanh %62 : vector<2x32xf32>
    %64 = arith.mulf %59, %63 : vector<2x32xf32>
    %cst_25 = arith.constant dense<0.000000e+00> : vector<2x128xf32>
    %65 = tpu.matmul %45, %14, %cst_25 {dimension_numbers = #tpu.dot_dimension_numbers<[1], [0], [0], [1], [0, 0, 1, 1], [], []>} : vector<2x32xf32>, vector<32x128xf32>, vector<2x128xf32> -> vector<2x128xf32>
    %66 = arith.addf %42, %65 : vector<2x128xf32>
    %67 = math.tanh %66 : vector<2x128xf32>
    %68 = arith.negf %66 : vector<2x128xf32>
    %69 = math.exp %68 : vector<2x128xf32>
    %cst_26 = arith.constant 1.000000e+00 : f32
    %70 = vector.broadcast %cst_26 : f32 to vector<2x128xf32>
    %71 = arith.addf %70, %69 : vector<2x128xf32>
    %72 = arith.divf %70, %71 : vector<2x128xf32>
    %73 = arith.select %5, %67, %72 : vector<2x128xi1>, vector<2x128xf32>
    %74 = vector.extract_strided_slice %73 {offsets = [0, 0], sizes = [2, 32], strides = [1, 1]} : vector<2x128xf32> to vector<2x32xf32>
    %75 = vector.extract_strided_slice %73 {offsets = [0, 32], sizes = [2, 32], strides = [1, 1]} : vector<2x128xf32> to vector<2x32xf32>
    %76 = vector.extract_strided_slice %73 {offsets = [0, 64], sizes = [2, 32], strides = [1, 1]} : vector<2x128xf32> to vector<2x32xf32>
    %77 = vector.extract_strided_slice %73 {offsets = [0, 96], sizes = [2, 32], strides = [1, 1]} : vector<2x128xf32> to vector<2x32xf32>
    %78 = arith.mulf %75, %46 : vector<2x32xf32>
    %79 = arith.mulf %74, %76 : vector<2x32xf32>
    %80 = arith.addf %78, %79 : vector<2x32xf32>
    %81 = math.tanh %80 : vector<2x32xf32>
    %82 = arith.mulf %77, %81 : vector<2x32xf32>
    %cst_27 = arith.constant dense<0.000000e+00> : vector<2x128xf32>
    %83 = tpu.matmul %64, %12, %cst_27 {dimension_numbers = #tpu.dot_dimension_numbers<[1], [0], [0], [1], [0, 0, 1, 1], [], []>} : vector<2x32xf32>, vector<32x128xf32>, vector<2x128xf32> -> vector<2x128xf32>
    %84 = arith.addf %28, %83 : vector<2x128xf32>
    %85 = math.tanh %84 : vector<2x128xf32>
    %86 = arith.negf %84 : vector<2x128xf32>
    %87 = math.exp %86 : vector<2x128xf32>
    %cst_28 = arith.constant 1.000000e+00 : f32
    %88 = vector.broadcast %cst_28 : f32 to vector<2x128xf32>
    %89 = arith.addf %88, %87 : vector<2x128xf32>
    %90 = arith.divf %88, %89 : vector<2x128xf32>
    %91 = arith.select %5, %85, %90 : vector<2x128xi1>, vector<2x128xf32>
    %92 = vector.extract_strided_slice %91 {offsets = [0, 0], sizes = [2, 32], strides = [1, 1]} : vector<2x128xf32> to vector<2x32xf32>
    %93 = vector.extract_strided_slice %91 {offsets = [0, 32], sizes = [2, 32], strides = [1, 1]} : vector<2x128xf32> to vector<2x32xf32>
    %94 = vector.extract_strided_slice %91 {offsets = [0, 64], sizes = [2, 32], strides = [1, 1]} : vector<2x128xf32> to vector<2x32xf32>
    %95 = vector.extract_strided_slice %91 {offsets = [0, 96], sizes = [2, 32], strides = [1, 1]} : vector<2x128xf32> to vector<2x32xf32>
    %96 = arith.mulf %93, %62 : vector<2x32xf32>
    %97 = arith.mulf %92, %94 : vector<2x32xf32>
    %98 = arith.addf %96, %97 : vector<2x32xf32>
    %99 = math.tanh %98 : vector<2x32xf32>
    %100 = arith.mulf %95, %99 : vector<2x32xf32>
    %cst_29 = arith.constant dense<0.000000e+00> : vector<2x128xf32>
    %101 = tpu.matmul %82, %14, %cst_29 {dimension_numbers = #tpu.dot_dimension_numbers<[1], [0], [0], [1], [0, 0, 1, 1], [], []>} : vector<2x32xf32>, vector<32x128xf32>, vector<2x128xf32> -> vector<2x128xf32>
    %102 = arith.addf %41, %101 : vector<2x128xf32>
    %103 = math.tanh %102 : vector<2x128xf32>
    %104 = arith.negf %102 : vector<2x128xf32>
    %105 = math.exp %104 : vector<2x128xf32>
    %cst_30 = arith.constant 1.000000e+00 : f32
    %106 = vector.broadcast %cst_30 : f32 to vector<2x128xf32>
    %107 = arith.addf %106, %105 : vector<2x128xf32>
    %108 = arith.divf %106, %107 : vector<2x128xf32>
    %109 = arith.select %5, %103, %108 : vector<2x128xi1>, vector<2x128xf32>
    %110 = vector.extract_strided_slice %109 {offsets = [0, 0], sizes = [2, 32], strides = [1, 1]} : vector<2x128xf32> to vector<2x32xf32>
    %111 = vector.extract_strided_slice %109 {offsets = [0, 32], sizes = [2, 32], strides = [1, 1]} : vector<2x128xf32> to vector<2x32xf32>
    %112 = vector.extract_strided_slice %109 {offsets = [0, 64], sizes = [2, 32], strides = [1, 1]} : vector<2x128xf32> to vector<2x32xf32>
    %113 = vector.extract_strided_slice %109 {offsets = [0, 96], sizes = [2, 32], strides = [1, 1]} : vector<2x128xf32> to vector<2x32xf32>
    %114 = arith.mulf %111, %80 : vector<2x32xf32>
    %115 = arith.mulf %110, %112 : vector<2x32xf32>
    %116 = arith.addf %114, %115 : vector<2x32xf32>
    %117 = math.tanh %116 : vector<2x32xf32>
    %118 = arith.mulf %113, %117 : vector<2x32xf32>
    %cst_31 = arith.constant dense<0.000000e+00> : vector<2x128xf32>
    %119 = tpu.matmul %100, %12, %cst_31 {dimension_numbers = #tpu.dot_dimension_numbers<[1], [0], [0], [1], [0, 0, 1, 1], [], []>} : vector<2x32xf32>, vector<32x128xf32>, vector<2x128xf32> -> vector<2x128xf32>
    %120 = arith.addf %29, %119 : vector<2x128xf32>
    %121 = math.tanh %120 : vector<2x128xf32>
    %122 = arith.negf %120 : vector<2x128xf32>
    %123 = math.exp %122 : vector<2x128xf32>
    %cst_32 = arith.constant 1.000000e+00 : f32
    %124 = vector.broadcast %cst_32 : f32 to vector<2x128xf32>
    %125 = arith.addf %124, %123 : vector<2x128xf32>
    %126 = arith.divf %124, %125 : vector<2x128xf32>
    %127 = arith.select %5, %121, %126 : vector<2x128xi1>, vector<2x128xf32>
    %128 = vector.extract_strided_slice %127 {offsets = [0, 0], sizes = [2, 32], strides = [1, 1]} : vector<2x128xf32> to vector<2x32xf32>
    %129 = vector.extract_strided_slice %127 {offsets = [0, 32], sizes = [2, 32], strides = [1, 1]} : vector<2x128xf32> to vector<2x32xf32>
    %130 = vector.extract_strided_slice %127 {offsets = [0, 64], sizes = [2, 32], strides = [1, 1]} : vector<2x128xf32> to vector<2x32xf32>
    %131 = vector.extract_strided_slice %127 {offsets = [0, 96], sizes = [2, 32], strides = [1, 1]} : vector<2x128xf32> to vector<2x32xf32>
    %132 = arith.mulf %129, %98 : vector<2x32xf32>
    %133 = arith.mulf %128, %130 : vector<2x32xf32>
    %134 = arith.addf %132, %133 : vector<2x32xf32>
    %135 = math.tanh %134 : vector<2x32xf32>
    %136 = arith.mulf %131, %135 : vector<2x32xf32>
    %cst_33 = arith.constant dense<0.000000e+00> : vector<2x128xf32>
    %137 = tpu.matmul %118, %14, %cst_33 {dimension_numbers = #tpu.dot_dimension_numbers<[1], [0], [0], [1], [0, 0, 1, 1], [], []>} : vector<2x32xf32>, vector<32x128xf32>, vector<2x128xf32> -> vector<2x128xf32>
    %138 = arith.addf %40, %137 : vector<2x128xf32>
    %139 = math.tanh %138 : vector<2x128xf32>
    %140 = arith.negf %138 : vector<2x128xf32>
    %141 = math.exp %140 : vector<2x128xf32>
    %cst_34 = arith.constant 1.000000e+00 : f32
    %142 = vector.broadcast %cst_34 : f32 to vector<2x128xf32>
    %143 = arith.addf %142, %141 : vector<2x128xf32>
    %144 = arith.divf %142, %143 : vector<2x128xf32>
    %145 = arith.select %5, %139, %144 : vector<2x128xi1>, vector<2x128xf32>
    %146 = vector.extract_strided_slice %145 {offsets = [0, 0], sizes = [2, 32], strides = [1, 1]} : vector<2x128xf32> to vector<2x32xf32>
    %147 = vector.extract_strided_slice %145 {offsets = [0, 32], sizes = [2, 32], strides = [1, 1]} : vector<2x128xf32> to vector<2x32xf32>
    %148 = vector.extract_strided_slice %145 {offsets = [0, 64], sizes = [2, 32], strides = [1, 1]} : vector<2x128xf32> to vector<2x32xf32>
    %149 = vector.extract_strided_slice %145 {offsets = [0, 96], sizes = [2, 32], strides = [1, 1]} : vector<2x128xf32> to vector<2x32xf32>
    %150 = arith.mulf %147, %116 : vector<2x32xf32>
    %151 = arith.mulf %146, %148 : vector<2x32xf32>
    %152 = arith.addf %150, %151 : vector<2x32xf32>
    %153 = math.tanh %152 : vector<2x32xf32>
    %154 = arith.mulf %149, %153 : vector<2x32xf32>
    %cst_35 = arith.constant dense<0.000000e+00> : vector<2x128xf32>
    %155 = tpu.matmul %136, %12, %cst_35 {dimension_numbers = #tpu.dot_dimension_numbers<[1], [0], [0], [1], [0, 0, 1, 1], [], []>} : vector<2x32xf32>, vector<32x128xf32>, vector<2x128xf32> -> vector<2x128xf32>
    %156 = arith.addf %30, %155 : vector<2x128xf32>
    %157 = math.tanh %156 : vector<2x128xf32>
    %158 = arith.negf %156 : vector<2x128xf32>
    %159 = math.exp %158 : vector<2x128xf32>
    %cst_36 = arith.constant 1.000000e+00 : f32
    %160 = vector.broadcast %cst_36 : f32 to vector<2x128xf32>
    %161 = arith.addf %160, %159 : vector<2x128xf32>
    %162 = arith.divf %160, %161 : vector<2x128xf32>
    %163 = arith.select %5, %157, %162 : vector<2x128xi1>, vector<2x128xf32>
    %164 = vector.extract_strided_slice %163 {offsets = [0, 0], sizes = [2, 32], strides = [1, 1]} : vector<2x128xf32> to vector<2x32xf32>
    %165 = vector.extract_strided_slice %163 {offsets = [0, 32], sizes = [2, 32], strides = [1, 1]} : vector<2x128xf32> to vector<2x32xf32>
    %166 = vector.extract_strided_slice %163 {offsets = [0, 64], sizes = [2, 32], strides = [1, 1]} : vector<2x128xf32> to vector<2x32xf32>
    %167 = vector.extract_strided_slice %163 {offsets = [0, 96], sizes = [2, 32], strides = [1, 1]} : vector<2x128xf32> to vector<2x32xf32>
    %168 = arith.mulf %165, %134 : vector<2x32xf32>
    %169 = arith.mulf %164, %166 : vector<2x32xf32>
    %170 = arith.addf %168, %169 : vector<2x32xf32>
    %171 = math.tanh %170 : vector<2x32xf32>
    %172 = arith.mulf %167, %171 : vector<2x32xf32>
    %cst_37 = arith.constant dense<0.000000e+00> : vector<2x128xf32>
    %173 = tpu.matmul %154, %14, %cst_37 {dimension_numbers = #tpu.dot_dimension_numbers<[1], [0], [0], [1], [0, 0, 1, 1], [], []>} : vector<2x32xf32>, vector<32x128xf32>, vector<2x128xf32> -> vector<2x128xf32>
    %174 = arith.addf %39, %173 : vector<2x128xf32>
    %175 = math.tanh %174 : vector<2x128xf32>
    %176 = arith.negf %174 : vector<2x128xf32>
    %177 = math.exp %176 : vector<2x128xf32>
    %cst_38 = arith.constant 1.000000e+00 : f32
    %178 = vector.broadcast %cst_38 : f32 to vector<2x128xf32>
    %179 = arith.addf %178, %177 : vector<2x128xf32>
    %180 = arith.divf %178, %179 : vector<2x128xf32>
    %181 = arith.select %5, %175, %180 : vector<2x128xi1>, vector<2x128xf32>
    %182 = vector.extract_strided_slice %181 {offsets = [0, 0], sizes = [2, 32], strides = [1, 1]} : vector<2x128xf32> to vector<2x32xf32>
    %183 = vector.extract_strided_slice %181 {offsets = [0, 32], sizes = [2, 32], strides = [1, 1]} : vector<2x128xf32> to vector<2x32xf32>
    %184 = vector.extract_strided_slice %181 {offsets = [0, 64], sizes = [2, 32], strides = [1, 1]} : vector<2x128xf32> to vector<2x32xf32>
    %185 = vector.extract_strided_slice %181 {offsets = [0, 96], sizes = [2, 32], strides = [1, 1]} : vector<2x128xf32> to vector<2x32xf32>
    %186 = arith.mulf %183, %152 : vector<2x32xf32>
    %187 = arith.mulf %182, %184 : vector<2x32xf32>
    %188 = arith.addf %186, %187 : vector<2x32xf32>
    %189 = math.tanh %188 : vector<2x32xf32>
    %190 = arith.mulf %185, %189 : vector<2x32xf32>
    %cst_39 = arith.constant dense<0.000000e+00> : vector<2x128xf32>
    %191 = tpu.matmul %172, %12, %cst_39 {dimension_numbers = #tpu.dot_dimension_numbers<[1], [0], [0], [1], [0, 0, 1, 1], [], []>} : vector<2x32xf32>, vector<32x128xf32>, vector<2x128xf32> -> vector<2x128xf32>
    %192 = arith.addf %31, %191 : vector<2x128xf32>
    %193 = math.tanh %192 : vector<2x128xf32>
    %194 = arith.negf %192 : vector<2x128xf32>
    %195 = math.exp %194 : vector<2x128xf32>
    %cst_40 = arith.constant 1.000000e+00 : f32
    %196 = vector.broadcast %cst_40 : f32 to vector<2x128xf32>
    %197 = arith.addf %196, %195 : vector<2x128xf32>
    %198 = arith.divf %196, %197 : vector<2x128xf32>
    %199 = arith.select %5, %193, %198 : vector<2x128xi1>, vector<2x128xf32>
    %200 = vector.extract_strided_slice %199 {offsets = [0, 0], sizes = [2, 32], strides = [1, 1]} : vector<2x128xf32> to vector<2x32xf32>
    %201 = vector.extract_strided_slice %199 {offsets = [0, 32], sizes = [2, 32], strides = [1, 1]} : vector<2x128xf32> to vector<2x32xf32>
    %202 = vector.extract_strided_slice %199 {offsets = [0, 64], sizes = [2, 32], strides = [1, 1]} : vector<2x128xf32> to vector<2x32xf32>
    %203 = vector.extract_strided_slice %199 {offsets = [0, 96], sizes = [2, 32], strides = [1, 1]} : vector<2x128xf32> to vector<2x32xf32>
    %204 = arith.mulf %201, %170 : vector<2x32xf32>
    %205 = arith.mulf %200, %202 : vector<2x32xf32>
    %206 = arith.addf %204, %205 : vector<2x32xf32>
    %207 = math.tanh %206 : vector<2x32xf32>
    %208 = arith.mulf %203, %207 : vector<2x32xf32>
    %cst_41 = arith.constant dense<0.000000e+00> : vector<2x128xf32>
    %209 = tpu.matmul %190, %14, %cst_41 {dimension_numbers = #tpu.dot_dimension_numbers<[1], [0], [0], [1], [0, 0, 1, 1], [], []>} : vector<2x32xf32>, vector<32x128xf32>, vector<2x128xf32> -> vector<2x128xf32>
    %210 = arith.addf %38, %209 : vector<2x128xf32>
    %211 = math.tanh %210 : vector<2x128xf32>
    %212 = arith.negf %210 : vector<2x128xf32>
    %213 = math.exp %212 : vector<2x128xf32>
    %cst_42 = arith.constant 1.000000e+00 : f32
    %214 = vector.broadcast %cst_42 : f32 to vector<2x128xf32>
    %215 = arith.addf %214, %213 : vector<2x128xf32>
    %216 = arith.divf %214, %215 : vector<2x128xf32>
    %217 = arith.select %5, %211, %216 : vector<2x128xi1>, vector<2x128xf32>
    %218 = vector.extract_strided_slice %217 {offsets = [0, 0], sizes = [2, 32], strides = [1, 1]} : vector<2x128xf32> to vector<2x32xf32>
    %219 = vector.extract_strided_slice %217 {offsets = [0, 32], sizes = [2, 32], strides = [1, 1]} : vector<2x128xf32> to vector<2x32xf32>
    %220 = vector.extract_strided_slice %217 {offsets = [0, 64], sizes = [2, 32], strides = [1, 1]} : vector<2x128xf32> to vector<2x32xf32>
    %221 = vector.extract_strided_slice %217 {offsets = [0, 96], sizes = [2, 32], strides = [1, 1]} : vector<2x128xf32> to vector<2x32xf32>
    %222 = arith.mulf %219, %188 : vector<2x32xf32>
    %223 = arith.mulf %218, %220 : vector<2x32xf32>
    %224 = arith.addf %222, %223 : vector<2x32xf32>
    %225 = math.tanh %224 : vector<2x32xf32>
    %226 = arith.mulf %221, %225 : vector<2x32xf32>
    %cst_43 = arith.constant dense<0.000000e+00> : vector<2x128xf32>
    %227 = tpu.matmul %208, %12, %cst_43 {dimension_numbers = #tpu.dot_dimension_numbers<[1], [0], [0], [1], [0, 0, 1, 1], [], []>} : vector<2x32xf32>, vector<32x128xf32>, vector<2x128xf32> -> vector<2x128xf32>
    %228 = arith.addf %32, %227 : vector<2x128xf32>
    %229 = math.tanh %228 : vector<2x128xf32>
    %230 = arith.negf %228 : vector<2x128xf32>
    %231 = math.exp %230 : vector<2x128xf32>
    %cst_44 = arith.constant 1.000000e+00 : f32
    %232 = vector.broadcast %cst_44 : f32 to vector<2x128xf32>
    %233 = arith.addf %232, %231 : vector<2x128xf32>
    %234 = arith.divf %232, %233 : vector<2x128xf32>
    %235 = arith.select %5, %229, %234 : vector<2x128xi1>, vector<2x128xf32>
    %236 = vector.extract_strided_slice %235 {offsets = [0, 0], sizes = [2, 32], strides = [1, 1]} : vector<2x128xf32> to vector<2x32xf32>
    %237 = vector.extract_strided_slice %235 {offsets = [0, 32], sizes = [2, 32], strides = [1, 1]} : vector<2x128xf32> to vector<2x32xf32>
    %238 = vector.extract_strided_slice %235 {offsets = [0, 64], sizes = [2, 32], strides = [1, 1]} : vector<2x128xf32> to vector<2x32xf32>
    %239 = vector.extract_strided_slice %235 {offsets = [0, 96], sizes = [2, 32], strides = [1, 1]} : vector<2x128xf32> to vector<2x32xf32>
    %240 = arith.mulf %237, %206 : vector<2x32xf32>
    %241 = arith.mulf %236, %238 : vector<2x32xf32>
    %242 = arith.addf %240, %241 : vector<2x32xf32>
    %243 = math.tanh %242 : vector<2x32xf32>
    %244 = arith.mulf %239, %243 : vector<2x32xf32>
    %cst_45 = arith.constant dense<0.000000e+00> : vector<2x128xf32>
    %245 = tpu.matmul %226, %14, %cst_45 {dimension_numbers = #tpu.dot_dimension_numbers<[1], [0], [0], [1], [0, 0, 1, 1], [], []>} : vector<2x32xf32>, vector<32x128xf32>, vector<2x128xf32> -> vector<2x128xf32>
    %246 = arith.addf %37, %245 : vector<2x128xf32>
    %247 = math.tanh %246 : vector<2x128xf32>
    %248 = arith.negf %246 : vector<2x128xf32>
    %249 = math.exp %248 : vector<2x128xf32>
    %cst_46 = arith.constant 1.000000e+00 : f32
    %250 = vector.broadcast %cst_46 : f32 to vector<2x128xf32>
    %251 = arith.addf %250, %249 : vector<2x128xf32>
    %252 = arith.divf %250, %251 : vector<2x128xf32>
    %253 = arith.select %5, %247, %252 : vector<2x128xi1>, vector<2x128xf32>
    %254 = vector.extract_strided_slice %253 {offsets = [0, 0], sizes = [2, 32], strides = [1, 1]} : vector<2x128xf32> to vector<2x32xf32>
    %255 = vector.extract_strided_slice %253 {offsets = [0, 32], sizes = [2, 32], strides = [1, 1]} : vector<2x128xf32> to vector<2x32xf32>
    %256 = vector.extract_strided_slice %253 {offsets = [0, 64], sizes = [2, 32], strides = [1, 1]} : vector<2x128xf32> to vector<2x32xf32>
    %257 = vector.extract_strided_slice %253 {offsets = [0, 96], sizes = [2, 32], strides = [1, 1]} : vector<2x128xf32> to vector<2x32xf32>
    %258 = arith.mulf %255, %224 : vector<2x32xf32>
    %259 = arith.mulf %254, %256 : vector<2x32xf32>
    %260 = arith.addf %258, %259 : vector<2x32xf32>
    %261 = math.tanh %260 : vector<2x32xf32>
    %262 = arith.mulf %257, %261 : vector<2x32xf32>
    %cst_47 = arith.constant dense<0.000000e+00> : vector<2x128xf32>
    %263 = tpu.matmul %244, %12, %cst_47 {dimension_numbers = #tpu.dot_dimension_numbers<[1], [0], [0], [1], [0, 0, 1, 1], [], []>} : vector<2x32xf32>, vector<32x128xf32>, vector<2x128xf32> -> vector<2x128xf32>
    %264 = arith.addf %33, %263 : vector<2x128xf32>
    %265 = math.tanh %264 : vector<2x128xf32>
    %266 = arith.negf %264 : vector<2x128xf32>
    %267 = math.exp %266 : vector<2x128xf32>
    %cst_48 = arith.constant 1.000000e+00 : f32
    %268 = vector.broadcast %cst_48 : f32 to vector<2x128xf32>
    %269 = arith.addf %268, %267 : vector<2x128xf32>
    %270 = arith.divf %268, %269 : vector<2x128xf32>
    %271 = arith.select %5, %265, %270 : vector<2x128xi1>, vector<2x128xf32>
    %272 = vector.extract_strided_slice %271 {offsets = [0, 0], sizes = [2, 32], strides = [1, 1]} : vector<2x128xf32> to vector<2x32xf32>
    %273 = vector.extract_strided_slice %271 {offsets = [0, 32], sizes = [2, 32], strides = [1, 1]} : vector<2x128xf32> to vector<2x32xf32>
    %274 = vector.extract_strided_slice %271 {offsets = [0, 64], sizes = [2, 32], strides = [1, 1]} : vector<2x128xf32> to vector<2x32xf32>
    %275 = vector.extract_strided_slice %271 {offsets = [0, 96], sizes = [2, 32], strides = [1, 1]} : vector<2x128xf32> to vector<2x32xf32>
    %276 = arith.mulf %273, %242 : vector<2x32xf32>
    %277 = arith.mulf %272, %274 : vector<2x32xf32>
    %278 = arith.addf %276, %277 : vector<2x32xf32>
    %279 = math.tanh %278 : vector<2x32xf32>
    %280 = arith.mulf %275, %279 : vector<2x32xf32>
    %cst_49 = arith.constant dense<0.000000e+00> : vector<2x128xf32>
    %281 = tpu.matmul %262, %14, %cst_49 {dimension_numbers = #tpu.dot_dimension_numbers<[1], [0], [0], [1], [0, 0, 1, 1], [], []>} : vector<2x32xf32>, vector<32x128xf32>, vector<2x128xf32> -> vector<2x128xf32>
    %282 = arith.addf %36, %281 : vector<2x128xf32>
    %283 = math.tanh %282 : vector<2x128xf32>
    %284 = arith.negf %282 : vector<2x128xf32>
    %285 = math.exp %284 : vector<2x128xf32>
    %cst_50 = arith.constant 1.000000e+00 : f32
    %286 = vector.broadcast %cst_50 : f32 to vector<2x128xf32>
    %287 = arith.addf %286, %285 : vector<2x128xf32>
    %288 = arith.divf %286, %287 : vector<2x128xf32>
    %289 = arith.select %5, %283, %288 : vector<2x128xi1>, vector<2x128xf32>
    %290 = vector.extract_strided_slice %289 {offsets = [0, 0], sizes = [2, 32], strides = [1, 1]} : vector<2x128xf32> to vector<2x32xf32>
    %291 = vector.extract_strided_slice %289 {offsets = [0, 32], sizes = [2, 32], strides = [1, 1]} : vector<2x128xf32> to vector<2x32xf32>
    %292 = vector.extract_strided_slice %289 {offsets = [0, 64], sizes = [2, 32], strides = [1, 1]} : vector<2x128xf32> to vector<2x32xf32>
    %293 = vector.extract_strided_slice %289 {offsets = [0, 96], sizes = [2, 32], strides = [1, 1]} : vector<2x128xf32> to vector<2x32xf32>
    %294 = arith.mulf %291, %260 : vector<2x32xf32>
    %295 = arith.mulf %290, %292 : vector<2x32xf32>
    %296 = arith.addf %294, %295 : vector<2x32xf32>
    %297 = math.tanh %296 : vector<2x32xf32>
    %298 = arith.mulf %293, %297 : vector<2x32xf32>
    %cst_51 = arith.constant dense<0.000000e+00> : vector<2x128xf32>
    %299 = tpu.matmul %280, %12, %cst_51 {dimension_numbers = #tpu.dot_dimension_numbers<[1], [0], [0], [1], [0, 0, 1, 1], [], []>} : vector<2x32xf32>, vector<32x128xf32>, vector<2x128xf32> -> vector<2x128xf32>
    %300 = arith.addf %34, %299 : vector<2x128xf32>
    %301 = math.tanh %300 : vector<2x128xf32>
    %302 = arith.negf %300 : vector<2x128xf32>
    %303 = math.exp %302 : vector<2x128xf32>
    %cst_52 = arith.constant 1.000000e+00 : f32
    %304 = vector.broadcast %cst_52 : f32 to vector<2x128xf32>
    %305 = arith.addf %304, %303 : vector<2x128xf32>
    %306 = arith.divf %304, %305 : vector<2x128xf32>
    %307 = arith.select %5, %301, %306 : vector<2x128xi1>, vector<2x128xf32>
    %308 = vector.extract_strided_slice %307 {offsets = [0, 0], sizes = [2, 32], strides = [1, 1]} : vector<2x128xf32> to vector<2x32xf32>
    %309 = vector.extract_strided_slice %307 {offsets = [0, 32], sizes = [2, 32], strides = [1, 1]} : vector<2x128xf32> to vector<2x32xf32>
    %310 = vector.extract_strided_slice %307 {offsets = [0, 64], sizes = [2, 32], strides = [1, 1]} : vector<2x128xf32> to vector<2x32xf32>
    %311 = vector.extract_strided_slice %307 {offsets = [0, 96], sizes = [2, 32], strides = [1, 1]} : vector<2x128xf32> to vector<2x32xf32>
    %312 = arith.mulf %309, %278 : vector<2x32xf32>
    %313 = arith.mulf %308, %310 : vector<2x32xf32>
    %314 = arith.addf %312, %313 : vector<2x32xf32>
    %315 = math.tanh %314 : vector<2x32xf32>
    %316 = arith.mulf %311, %315 : vector<2x32xf32>
    %cst_53 = arith.constant dense<0.000000e+00> : vector<2x128xf32>
    %317 = tpu.matmul %298, %14, %cst_53 {dimension_numbers = #tpu.dot_dimension_numbers<[1], [0], [0], [1], [0, 0, 1, 1], [], []>} : vector<2x32xf32>, vector<32x128xf32>, vector<2x128xf32> -> vector<2x128xf32>
    %318 = arith.addf %35, %317 : vector<2x128xf32>
    %319 = math.tanh %318 : vector<2x128xf32>
    %320 = arith.negf %318 : vector<2x128xf32>
    %321 = math.exp %320 : vector<2x128xf32>
    %cst_54 = arith.constant 1.000000e+00 : f32
    %322 = vector.broadcast %cst_54 : f32 to vector<2x128xf32>
    %323 = arith.addf %322, %321 : vector<2x128xf32>
    %324 = arith.divf %322, %323 : vector<2x128xf32>
    %325 = arith.select %5, %319, %324 : vector<2x128xi1>, vector<2x128xf32>
    %326 = vector.extract_strided_slice %325 {offsets = [0, 0], sizes = [2, 32], strides = [1, 1]} : vector<2x128xf32> to vector<2x32xf32>
    %327 = vector.extract_strided_slice %325 {offsets = [0, 32], sizes = [2, 32], strides = [1, 1]} : vector<2x128xf32> to vector<2x32xf32>
    %328 = vector.extract_strided_slice %325 {offsets = [0, 64], sizes = [2, 32], strides = [1, 1]} : vector<2x128xf32> to vector<2x32xf32>
    %329 = vector.extract_strided_slice %325 {offsets = [0, 96], sizes = [2, 32], strides = [1, 1]} : vector<2x128xf32> to vector<2x32xf32>
    %330 = arith.mulf %327, %296 : vector<2x32xf32>
    %331 = arith.mulf %326, %328 : vector<2x32xf32>
    %332 = arith.addf %330, %331 : vector<2x32xf32>
    %333 = math.tanh %332 : vector<2x32xf32>
    %334 = arith.mulf %329, %333 : vector<2x32xf32>
    %c2 = arith.constant 2 : index
    %c0_55 = arith.constant 0 : index
    %c0_56 = arith.constant 0 : index
    %335 = vector.load %arg3[%c2, %c0_55, %c0_56] : memref<4x1x128xf32, #tpu.memory_space<vmem>>, vector<1x1x128xf32>
    %336 = vector.shape_cast %335 : vector<1x1x128xf32> to vector<1x128xf32>
    %c3 = arith.constant 3 : index
    %c0_57 = arith.constant 0 : index
    %c0_58 = arith.constant 0 : index
    %337 = vector.load %arg3[%c3, %c0_57, %c0_58] : memref<4x1x128xf32, #tpu.memory_space<vmem>>, vector<1x1x128xf32>
    %338 = vector.shape_cast %337 : vector<1x1x128xf32> to vector<1x128xf32>
    %c2_59 = arith.constant 2 : index
    %c0_60 = arith.constant 0 : index
    %c0_61 = arith.constant 0 : index
    %339 = vector.load %arg2[%c2_59, %c0_60, %c0_61] : memref<4x32x128xf32, #tpu.memory_space<vmem>>, vector<1x32x128xf32>
    %340 = vector.shape_cast %339 : vector<1x32x128xf32> to vector<32x128xf32>
    %c3_62 = arith.constant 3 : index
    %c0_63 = arith.constant 0 : index
    %c0_64 = arith.constant 0 : index
    %341 = vector.load %arg2[%c3_62, %c0_63, %c0_64] : memref<4x32x128xf32, #tpu.memory_space<vmem>>, vector<1x32x128xf32>
    %342 = vector.shape_cast %341 : vector<1x32x128xf32> to vector<32x128xf32>
    %c2_65 = arith.constant 2 : index
    %c0_66 = arith.constant 0 : index
    %c0_67 = arith.constant 0 : index
    %343 = vector.load %arg1[%c2_65, %c0_66, %c0_67] : memref<4x64x128xf32, #tpu.memory_space<vmem>>, vector<1x64x128xf32>
    %344 = vector.shape_cast %343 : vector<1x64x128xf32> to vector<64x128xf32>
    %c3_68 = arith.constant 3 : index
    %c0_69 = arith.constant 0 : index
    %c0_70 = arith.constant 0 : index
    %345 = vector.load %arg1[%c3_68, %c0_69, %c0_70] : memref<4x64x128xf32, #tpu.memory_space<vmem>>, vector<1x64x128xf32>
    %346 = vector.shape_cast %345 : vector<1x64x128xf32> to vector<64x128xf32>
    %347 = tpu.concatenate %64, %100, %136, %172, %208, %244, %280, %316 in 0 : vector<2x32xf32>, vector<2x32xf32>, vector<2x32xf32>, vector<2x32xf32>, vector<2x32xf32>, vector<2x32xf32>, vector<2x32xf32>, vector<2x32xf32> -> vector<16x32xf32>
    %348 = tpu.concatenate %334, %298, %262, %226, %190, %154, %118, %82 in 0 : vector<2x32xf32>, vector<2x32xf32>, vector<2x32xf32>, vector<2x32xf32>, vector<2x32xf32>, vector<2x32xf32>, vector<2x32xf32>, vector<2x32xf32> -> vector<16x32xf32>
    %349 = vector.extract_strided_slice %344 {offsets = [0, 0], sizes = [32, 128], strides = [1, 1]} : vector<64x128xf32> to vector<32x128xf32>
    %cst_71 = arith.constant dense<0.000000e+00> : vector<16x128xf32>
    %350 = tpu.matmul %347, %349, %cst_71 {dimension_numbers = #tpu.dot_dimension_numbers<[1], [0], [0], [1], [0, 0, 1, 1], [], []>} : vector<16x32xf32>, vector<32x128xf32>, vector<16x128xf32> -> vector<16x128xf32>
    %351 = vector.extract_strided_slice %344 {offsets = [32, 0], sizes = [32, 128], strides = [1, 1]} : vector<64x128xf32> to vector<32x128xf32>
    %cst_72 = arith.constant dense<0.000000e+00> : vector<16x128xf32>
    %352 = tpu.matmul %348, %351, %cst_72 {dimension_numbers = #tpu.dot_dimension_numbers<[1], [0], [0], [1], [0, 0, 1, 1], [], []>} : vector<16x32xf32>, vector<32x128xf32>, vector<16x128xf32> -> vector<16x128xf32>
    %353 = arith.addf %350, %352 : vector<16x128xf32>
    %354 = vector.broadcast %336 : vector<1x128xf32> to vector<16x128xf32>
    %355 = arith.addf %353, %354 : vector<16x128xf32>
    %356 = vector.extract_strided_slice %346 {offsets = [0, 0], sizes = [32, 128], strides = [1, 1]} : vector<64x128xf32> to vector<32x128xf32>
    %cst_73 = arith.constant dense<0.000000e+00> : vector<16x128xf32>
    %357 = tpu.matmul %347, %356, %cst_73 {dimension_numbers = #tpu.dot_dimension_numbers<[1], [0], [0], [1], [0, 0, 1, 1], [], []>} : vector<16x32xf32>, vector<32x128xf32>, vector<16x128xf32> -> vector<16x128xf32>
    %358 = vector.extract_strided_slice %346 {offsets = [32, 0], sizes = [32, 128], strides = [1, 1]} : vector<64x128xf32> to vector<32x128xf32>
    %cst_74 = arith.constant dense<0.000000e+00> : vector<16x128xf32>
    %359 = tpu.matmul %348, %358, %cst_74 {dimension_numbers = #tpu.dot_dimension_numbers<[1], [0], [0], [1], [0, 0, 1, 1], [], []>} : vector<16x32xf32>, vector<32x128xf32>, vector<16x128xf32> -> vector<16x128xf32>
    %360 = arith.addf %357, %359 : vector<16x128xf32>
    %361 = vector.broadcast %338 : vector<1x128xf32> to vector<16x128xf32>
    %362 = arith.addf %360, %361 : vector<16x128xf32>
    %363 = vector.extract_strided_slice %355 {offsets = [0, 0], sizes = [2, 128], strides = [1, 1]} : vector<16x128xf32> to vector<2x128xf32>
    %364 = vector.extract_strided_slice %355 {offsets = [2, 0], sizes = [2, 128], strides = [1, 1]} : vector<16x128xf32> to vector<2x128xf32>
    %365 = vector.extract_strided_slice %355 {offsets = [4, 0], sizes = [2, 128], strides = [1, 1]} : vector<16x128xf32> to vector<2x128xf32>
    %366 = vector.extract_strided_slice %355 {offsets = [6, 0], sizes = [2, 128], strides = [1, 1]} : vector<16x128xf32> to vector<2x128xf32>
    %367 = vector.extract_strided_slice %355 {offsets = [8, 0], sizes = [2, 128], strides = [1, 1]} : vector<16x128xf32> to vector<2x128xf32>
    %368 = vector.extract_strided_slice %355 {offsets = [10, 0], sizes = [2, 128], strides = [1, 1]} : vector<16x128xf32> to vector<2x128xf32>
    %369 = vector.extract_strided_slice %355 {offsets = [12, 0], sizes = [2, 128], strides = [1, 1]} : vector<16x128xf32> to vector<2x128xf32>
    %370 = vector.extract_strided_slice %355 {offsets = [14, 0], sizes = [2, 128], strides = [1, 1]} : vector<16x128xf32> to vector<2x128xf32>
    %371 = vector.extract_strided_slice %362 {offsets = [14, 0], sizes = [2, 128], strides = [1, 1]} : vector<16x128xf32> to vector<2x128xf32>
    %cst_75 = arith.constant 0.000000e+00 : f32
    %372 = vector.broadcast %cst_75 : f32 to vector<2x32xf32>
    %cst_76 = arith.constant 0.000000e+00 : f32
    %373 = vector.broadcast %cst_76 : f32 to vector<2x32xf32>
    %cst_77 = arith.constant 0.000000e+00 : f32
    %374 = vector.broadcast %cst_77 : f32 to vector<2x32xf32>
    %cst_78 = arith.constant 0.000000e+00 : f32
    %375 = vector.broadcast %cst_78 : f32 to vector<2x32xf32>
    %cst_79 = arith.constant dense<0.000000e+00> : vector<2x128xf32>
    %376 = tpu.matmul %372, %340, %cst_79 {dimension_numbers = #tpu.dot_dimension_numbers<[1], [0], [0], [1], [0, 0, 1, 1], [], []>} : vector<2x32xf32>, vector<32x128xf32>, vector<2x128xf32> -> vector<2x128xf32>
    %377 = arith.addf %363, %376 : vector<2x128xf32>
    %378 = math.tanh %377 : vector<2x128xf32>
    %379 = arith.negf %377 : vector<2x128xf32>
    %380 = math.exp %379 : vector<2x128xf32>
    %cst_80 = arith.constant 1.000000e+00 : f32
    %381 = vector.broadcast %cst_80 : f32 to vector<2x128xf32>
    %382 = arith.addf %381, %380 : vector<2x128xf32>
    %383 = arith.divf %381, %382 : vector<2x128xf32>
    %384 = arith.select %5, %378, %383 : vector<2x128xi1>, vector<2x128xf32>
    %385 = vector.extract_strided_slice %384 {offsets = [0, 0], sizes = [2, 32], strides = [1, 1]} : vector<2x128xf32> to vector<2x32xf32>
    %386 = vector.extract_strided_slice %384 {offsets = [0, 32], sizes = [2, 32], strides = [1, 1]} : vector<2x128xf32> to vector<2x32xf32>
    %387 = vector.extract_strided_slice %384 {offsets = [0, 64], sizes = [2, 32], strides = [1, 1]} : vector<2x128xf32> to vector<2x32xf32>
    %388 = vector.extract_strided_slice %384 {offsets = [0, 96], sizes = [2, 32], strides = [1, 1]} : vector<2x128xf32> to vector<2x32xf32>
    %389 = arith.mulf %386, %373 : vector<2x32xf32>
    %390 = arith.mulf %385, %387 : vector<2x32xf32>
    %391 = arith.addf %389, %390 : vector<2x32xf32>
    %392 = math.tanh %391 : vector<2x32xf32>
    %393 = arith.mulf %388, %392 : vector<2x32xf32>
    %cst_81 = arith.constant dense<0.000000e+00> : vector<2x128xf32>
    %394 = tpu.matmul %374, %342, %cst_81 {dimension_numbers = #tpu.dot_dimension_numbers<[1], [0], [0], [1], [0, 0, 1, 1], [], []>} : vector<2x32xf32>, vector<32x128xf32>, vector<2x128xf32> -> vector<2x128xf32>
    %395 = arith.addf %371, %394 : vector<2x128xf32>
    %396 = math.tanh %395 : vector<2x128xf32>
    %397 = arith.negf %395 : vector<2x128xf32>
    %398 = math.exp %397 : vector<2x128xf32>
    %cst_82 = arith.constant 1.000000e+00 : f32
    %399 = vector.broadcast %cst_82 : f32 to vector<2x128xf32>
    %400 = arith.addf %399, %398 : vector<2x128xf32>
    %401 = arith.divf %399, %400 : vector<2x128xf32>
    %402 = arith.select %5, %396, %401 : vector<2x128xi1>, vector<2x128xf32>
    %403 = vector.extract_strided_slice %402 {offsets = [0, 0], sizes = [2, 32], strides = [1, 1]} : vector<2x128xf32> to vector<2x32xf32>
    %404 = vector.extract_strided_slice %402 {offsets = [0, 32], sizes = [2, 32], strides = [1, 1]} : vector<2x128xf32> to vector<2x32xf32>
    %405 = vector.extract_strided_slice %402 {offsets = [0, 64], sizes = [2, 32], strides = [1, 1]} : vector<2x128xf32> to vector<2x32xf32>
    %406 = vector.extract_strided_slice %402 {offsets = [0, 96], sizes = [2, 32], strides = [1, 1]} : vector<2x128xf32> to vector<2x32xf32>
    %407 = arith.mulf %404, %375 : vector<2x32xf32>
    %408 = arith.mulf %403, %405 : vector<2x32xf32>
    %409 = arith.addf %407, %408 : vector<2x32xf32>
    %410 = math.tanh %409 : vector<2x32xf32>
    %411 = arith.mulf %406, %410 : vector<2x32xf32>
    %cst_83 = arith.constant dense<0.000000e+00> : vector<2x128xf32>
    %412 = tpu.matmul %393, %340, %cst_83 {dimension_numbers = #tpu.dot_dimension_numbers<[1], [0], [0], [1], [0, 0, 1, 1], [], []>} : vector<2x32xf32>, vector<32x128xf32>, vector<2x128xf32> -> vector<2x128xf32>
    %413 = arith.addf %364, %412 : vector<2x128xf32>
    %414 = math.tanh %413 : vector<2x128xf32>
    %415 = arith.negf %413 : vector<2x128xf32>
    %416 = math.exp %415 : vector<2x128xf32>
    %cst_84 = arith.constant 1.000000e+00 : f32
    %417 = vector.broadcast %cst_84 : f32 to vector<2x128xf32>
    %418 = arith.addf %417, %416 : vector<2x128xf32>
    %419 = arith.divf %417, %418 : vector<2x128xf32>
    %420 = arith.select %5, %414, %419 : vector<2x128xi1>, vector<2x128xf32>
    %421 = vector.extract_strided_slice %420 {offsets = [0, 0], sizes = [2, 32], strides = [1, 1]} : vector<2x128xf32> to vector<2x32xf32>
    %422 = vector.extract_strided_slice %420 {offsets = [0, 32], sizes = [2, 32], strides = [1, 1]} : vector<2x128xf32> to vector<2x32xf32>
    %423 = vector.extract_strided_slice %420 {offsets = [0, 64], sizes = [2, 32], strides = [1, 1]} : vector<2x128xf32> to vector<2x32xf32>
    %424 = vector.extract_strided_slice %420 {offsets = [0, 96], sizes = [2, 32], strides = [1, 1]} : vector<2x128xf32> to vector<2x32xf32>
    %425 = arith.mulf %422, %391 : vector<2x32xf32>
    %426 = arith.mulf %421, %423 : vector<2x32xf32>
    %427 = arith.addf %425, %426 : vector<2x32xf32>
    %428 = math.tanh %427 : vector<2x32xf32>
    %429 = arith.mulf %424, %428 : vector<2x32xf32>
    %cst_85 = arith.constant dense<0.000000e+00> : vector<2x128xf32>
    %430 = tpu.matmul %429, %340, %cst_85 {dimension_numbers = #tpu.dot_dimension_numbers<[1], [0], [0], [1], [0, 0, 1, 1], [], []>} : vector<2x32xf32>, vector<32x128xf32>, vector<2x128xf32> -> vector<2x128xf32>
    %431 = arith.addf %365, %430 : vector<2x128xf32>
    %432 = math.tanh %431 : vector<2x128xf32>
    %433 = arith.negf %431 : vector<2x128xf32>
    %434 = math.exp %433 : vector<2x128xf32>
    %cst_86 = arith.constant 1.000000e+00 : f32
    %435 = vector.broadcast %cst_86 : f32 to vector<2x128xf32>
    %436 = arith.addf %435, %434 : vector<2x128xf32>
    %437 = arith.divf %435, %436 : vector<2x128xf32>
    %438 = arith.select %5, %432, %437 : vector<2x128xi1>, vector<2x128xf32>
    %439 = vector.extract_strided_slice %438 {offsets = [0, 0], sizes = [2, 32], strides = [1, 1]} : vector<2x128xf32> to vector<2x32xf32>
    %440 = vector.extract_strided_slice %438 {offsets = [0, 32], sizes = [2, 32], strides = [1, 1]} : vector<2x128xf32> to vector<2x32xf32>
    %441 = vector.extract_strided_slice %438 {offsets = [0, 64], sizes = [2, 32], strides = [1, 1]} : vector<2x128xf32> to vector<2x32xf32>
    %442 = vector.extract_strided_slice %438 {offsets = [0, 96], sizes = [2, 32], strides = [1, 1]} : vector<2x128xf32> to vector<2x32xf32>
    %443 = arith.mulf %440, %427 : vector<2x32xf32>
    %444 = arith.mulf %439, %441 : vector<2x32xf32>
    %445 = arith.addf %443, %444 : vector<2x32xf32>
    %446 = math.tanh %445 : vector<2x32xf32>
    %447 = arith.mulf %442, %446 : vector<2x32xf32>
    %cst_87 = arith.constant dense<0.000000e+00> : vector<2x128xf32>
    %448 = tpu.matmul %447, %340, %cst_87 {dimension_numbers = #tpu.dot_dimension_numbers<[1], [0], [0], [1], [0, 0, 1, 1], [], []>} : vector<2x32xf32>, vector<32x128xf32>, vector<2x128xf32> -> vector<2x128xf32>
    %449 = arith.addf %366, %448 : vector<2x128xf32>
    %450 = math.tanh %449 : vector<2x128xf32>
    %451 = arith.negf %449 : vector<2x128xf32>
    %452 = math.exp %451 : vector<2x128xf32>
    %cst_88 = arith.constant 1.000000e+00 : f32
    %453 = vector.broadcast %cst_88 : f32 to vector<2x128xf32>
    %454 = arith.addf %453, %452 : vector<2x128xf32>
    %455 = arith.divf %453, %454 : vector<2x128xf32>
    %456 = arith.select %5, %450, %455 : vector<2x128xi1>, vector<2x128xf32>
    %457 = vector.extract_strided_slice %456 {offsets = [0, 0], sizes = [2, 32], strides = [1, 1]} : vector<2x128xf32> to vector<2x32xf32>
    %458 = vector.extract_strided_slice %456 {offsets = [0, 32], sizes = [2, 32], strides = [1, 1]} : vector<2x128xf32> to vector<2x32xf32>
    %459 = vector.extract_strided_slice %456 {offsets = [0, 64], sizes = [2, 32], strides = [1, 1]} : vector<2x128xf32> to vector<2x32xf32>
    %460 = vector.extract_strided_slice %456 {offsets = [0, 96], sizes = [2, 32], strides = [1, 1]} : vector<2x128xf32> to vector<2x32xf32>
    %461 = arith.mulf %458, %445 : vector<2x32xf32>
    %462 = arith.mulf %457, %459 : vector<2x32xf32>
    %463 = arith.addf %461, %462 : vector<2x32xf32>
    %464 = math.tanh %463 : vector<2x32xf32>
    %465 = arith.mulf %460, %464 : vector<2x32xf32>
    %cst_89 = arith.constant dense<0.000000e+00> : vector<2x128xf32>
    %466 = tpu.matmul %465, %340, %cst_89 {dimension_numbers = #tpu.dot_dimension_numbers<[1], [0], [0], [1], [0, 0, 1, 1], [], []>} : vector<2x32xf32>, vector<32x128xf32>, vector<2x128xf32> -> vector<2x128xf32>
    %467 = arith.addf %367, %466 : vector<2x128xf32>
    %468 = math.tanh %467 : vector<2x128xf32>
    %469 = arith.negf %467 : vector<2x128xf32>
    %470 = math.exp %469 : vector<2x128xf32>
    %cst_90 = arith.constant 1.000000e+00 : f32
    %471 = vector.broadcast %cst_90 : f32 to vector<2x128xf32>
    %472 = arith.addf %471, %470 : vector<2x128xf32>
    %473 = arith.divf %471, %472 : vector<2x128xf32>
    %474 = arith.select %5, %468, %473 : vector<2x128xi1>, vector<2x128xf32>
    %475 = vector.extract_strided_slice %474 {offsets = [0, 0], sizes = [2, 32], strides = [1, 1]} : vector<2x128xf32> to vector<2x32xf32>
    %476 = vector.extract_strided_slice %474 {offsets = [0, 32], sizes = [2, 32], strides = [1, 1]} : vector<2x128xf32> to vector<2x32xf32>
    %477 = vector.extract_strided_slice %474 {offsets = [0, 64], sizes = [2, 32], strides = [1, 1]} : vector<2x128xf32> to vector<2x32xf32>
    %478 = vector.extract_strided_slice %474 {offsets = [0, 96], sizes = [2, 32], strides = [1, 1]} : vector<2x128xf32> to vector<2x32xf32>
    %479 = arith.mulf %476, %463 : vector<2x32xf32>
    %480 = arith.mulf %475, %477 : vector<2x32xf32>
    %481 = arith.addf %479, %480 : vector<2x32xf32>
    %482 = math.tanh %481 : vector<2x32xf32>
    %483 = arith.mulf %478, %482 : vector<2x32xf32>
    %cst_91 = arith.constant dense<0.000000e+00> : vector<2x128xf32>
    %484 = tpu.matmul %483, %340, %cst_91 {dimension_numbers = #tpu.dot_dimension_numbers<[1], [0], [0], [1], [0, 0, 1, 1], [], []>} : vector<2x32xf32>, vector<32x128xf32>, vector<2x128xf32> -> vector<2x128xf32>
    %485 = arith.addf %368, %484 : vector<2x128xf32>
    %486 = math.tanh %485 : vector<2x128xf32>
    %487 = arith.negf %485 : vector<2x128xf32>
    %488 = math.exp %487 : vector<2x128xf32>
    %cst_92 = arith.constant 1.000000e+00 : f32
    %489 = vector.broadcast %cst_92 : f32 to vector<2x128xf32>
    %490 = arith.addf %489, %488 : vector<2x128xf32>
    %491 = arith.divf %489, %490 : vector<2x128xf32>
    %492 = arith.select %5, %486, %491 : vector<2x128xi1>, vector<2x128xf32>
    %493 = vector.extract_strided_slice %492 {offsets = [0, 0], sizes = [2, 32], strides = [1, 1]} : vector<2x128xf32> to vector<2x32xf32>
    %494 = vector.extract_strided_slice %492 {offsets = [0, 32], sizes = [2, 32], strides = [1, 1]} : vector<2x128xf32> to vector<2x32xf32>
    %495 = vector.extract_strided_slice %492 {offsets = [0, 64], sizes = [2, 32], strides = [1, 1]} : vector<2x128xf32> to vector<2x32xf32>
    %496 = vector.extract_strided_slice %492 {offsets = [0, 96], sizes = [2, 32], strides = [1, 1]} : vector<2x128xf32> to vector<2x32xf32>
    %497 = arith.mulf %494, %481 : vector<2x32xf32>
    %498 = arith.mulf %493, %495 : vector<2x32xf32>
    %499 = arith.addf %497, %498 : vector<2x32xf32>
    %500 = math.tanh %499 : vector<2x32xf32>
    %501 = arith.mulf %496, %500 : vector<2x32xf32>
    %cst_93 = arith.constant dense<0.000000e+00> : vector<2x128xf32>
    %502 = tpu.matmul %501, %340, %cst_93 {dimension_numbers = #tpu.dot_dimension_numbers<[1], [0], [0], [1], [0, 0, 1, 1], [], []>} : vector<2x32xf32>, vector<32x128xf32>, vector<2x128xf32> -> vector<2x128xf32>
    %503 = arith.addf %369, %502 : vector<2x128xf32>
    %504 = math.tanh %503 : vector<2x128xf32>
    %505 = arith.negf %503 : vector<2x128xf32>
    %506 = math.exp %505 : vector<2x128xf32>
    %cst_94 = arith.constant 1.000000e+00 : f32
    %507 = vector.broadcast %cst_94 : f32 to vector<2x128xf32>
    %508 = arith.addf %507, %506 : vector<2x128xf32>
    %509 = arith.divf %507, %508 : vector<2x128xf32>
    %510 = arith.select %5, %504, %509 : vector<2x128xi1>, vector<2x128xf32>
    %511 = vector.extract_strided_slice %510 {offsets = [0, 0], sizes = [2, 32], strides = [1, 1]} : vector<2x128xf32> to vector<2x32xf32>
    %512 = vector.extract_strided_slice %510 {offsets = [0, 32], sizes = [2, 32], strides = [1, 1]} : vector<2x128xf32> to vector<2x32xf32>
    %513 = vector.extract_strided_slice %510 {offsets = [0, 64], sizes = [2, 32], strides = [1, 1]} : vector<2x128xf32> to vector<2x32xf32>
    %514 = vector.extract_strided_slice %510 {offsets = [0, 96], sizes = [2, 32], strides = [1, 1]} : vector<2x128xf32> to vector<2x32xf32>
    %515 = arith.mulf %512, %499 : vector<2x32xf32>
    %516 = arith.mulf %511, %513 : vector<2x32xf32>
    %517 = arith.addf %515, %516 : vector<2x32xf32>
    %518 = math.tanh %517 : vector<2x32xf32>
    %519 = arith.mulf %514, %518 : vector<2x32xf32>
    %cst_95 = arith.constant dense<0.000000e+00> : vector<2x128xf32>
    %520 = tpu.matmul %519, %340, %cst_95 {dimension_numbers = #tpu.dot_dimension_numbers<[1], [0], [0], [1], [0, 0, 1, 1], [], []>} : vector<2x32xf32>, vector<32x128xf32>, vector<2x128xf32> -> vector<2x128xf32>
    %521 = arith.addf %370, %520 : vector<2x128xf32>
    %522 = math.tanh %521 : vector<2x128xf32>
    %523 = arith.negf %521 : vector<2x128xf32>
    %524 = math.exp %523 : vector<2x128xf32>
    %cst_96 = arith.constant 1.000000e+00 : f32
    %525 = vector.broadcast %cst_96 : f32 to vector<2x128xf32>
    %526 = arith.addf %525, %524 : vector<2x128xf32>
    %527 = arith.divf %525, %526 : vector<2x128xf32>
    %528 = arith.select %5, %522, %527 : vector<2x128xi1>, vector<2x128xf32>
    %529 = vector.extract_strided_slice %528 {offsets = [0, 0], sizes = [2, 32], strides = [1, 1]} : vector<2x128xf32> to vector<2x32xf32>
    %530 = vector.extract_strided_slice %528 {offsets = [0, 32], sizes = [2, 32], strides = [1, 1]} : vector<2x128xf32> to vector<2x32xf32>
    %531 = vector.extract_strided_slice %528 {offsets = [0, 64], sizes = [2, 32], strides = [1, 1]} : vector<2x128xf32> to vector<2x32xf32>
    %532 = vector.extract_strided_slice %528 {offsets = [0, 96], sizes = [2, 32], strides = [1, 1]} : vector<2x128xf32> to vector<2x32xf32>
    %533 = arith.mulf %530, %517 : vector<2x32xf32>
    %534 = arith.mulf %529, %531 : vector<2x32xf32>
    %535 = arith.addf %533, %534 : vector<2x32xf32>
    %536 = math.tanh %535 : vector<2x32xf32>
    %537 = arith.mulf %532, %536 : vector<2x32xf32>
    %c0_97 = arith.constant 0 : index
    %c0_98 = arith.constant 0 : index
    %538 = vector.load %arg4[%c0_97, %c0_98] : memref<64x2xf32, #tpu.memory_space<vmem>>, vector<64x2xf32>
    %539 = vector.extract_strided_slice %538 {offsets = [0, 0], sizes = [32, 2], strides = [1, 1]} : vector<64x2xf32> to vector<32x2xf32>
    %cst_99 = arith.constant dense<0.000000e+00> : vector<2x2xf32>
    %540 = tpu.matmul %537, %539, %cst_99 {dimension_numbers = #tpu.dot_dimension_numbers<[1], [0], [0], [1], [0, 0, 1, 1], [], []>} : vector<2x32xf32>, vector<32x2xf32>, vector<2x2xf32> -> vector<2x2xf32>
    %541 = vector.extract_strided_slice %538 {offsets = [32, 0], sizes = [32, 2], strides = [1, 1]} : vector<64x2xf32> to vector<32x2xf32>
    %cst_100 = arith.constant dense<0.000000e+00> : vector<2x2xf32>
    %542 = tpu.matmul %411, %541, %cst_100 {dimension_numbers = #tpu.dot_dimension_numbers<[1], [0], [0], [1], [0, 0, 1, 1], [], []>} : vector<2x32xf32>, vector<32x2xf32>, vector<2x2xf32> -> vector<2x2xf32>
    %543 = arith.addf %540, %542 : vector<2x2xf32>
    %c0_101 = arith.constant 0 : index
    %c0_102 = arith.constant 0 : index
    %544 = vector.load %arg5[%c0_101, %c0_102] : memref<1x2xf32, #tpu.memory_space<vmem>>, vector<1x2xf32>
    %545 = vector.broadcast %544 : vector<1x2xf32> to vector<2x2xf32>
    %546 = arith.addf %543, %545 : vector<2x2xf32>
    %c0_103 = arith.constant 0 : index
    %c0_104 = arith.constant 0 : index
    %547 = vector.load %arg6[%c0_103, %c0_104] : memref<2x2xf32, #tpu.memory_space<vmem>>, vector<2x2xf32>
    tpu.vector_store %arg6[%c0_103, %c0_104], %546 {strides = array<i32>} : memref<2x2xf32, #tpu.memory_space<vmem>>, vector<2x2xf32>,
    return
  }
}

</mosaic_0001>

<bundles_post_ra>
// kernel: bilstm_forward.1
= control target key start
LH: loop header
LB: loop body
LE: loop exit
PB: predicated region body
PF: predicated region fallthrough
CT: control target
= control target key end

     0   :  { %vm51_vm0 = vcmask 130048   ;;  %s3130_s0 = inlined_call_operand.vmem [shape: f32[16,16], index: 0, kind: input, shape index: {}]   ;;  %s3131_s1 = inlined_call_operand.vmem [shape: f32[4,64,128], index: 1, kind: input, shape index: {}]   ;;  %s3132_s2 = inlined_call_operand.vmem [shape: f32[4,32,128], index: 2, kind: input, shape index: {}]   ;;  %s3133_s3 = inlined_call_operand.vmem [shape: f32[4,1,128], index: 3, kind: input, shape index: {}]   ;;  %s3134_s4 = inlined_call_operand.vmem [shape: f32[64,2], index: 4, kind: input, shape index: {}]   ;;  %s3135_s5 = inlined_call_operand.vmem [shape: f32[1,2], index: 5, kind: input, shape index: {}]   ;;  %s3136_s6 = inlined_call_operand.hbm [shape: f32[2,2], index: 6, kind: output, shape index: {}]  }
   0x1   :  { %v2446_v0 = vld [vmem:[%s3132_s2 + $0x38] sm:$0xff]  ;;  %v2082_v1 = vld [vmem:[%s3131_s1 + $0x48] sm:$0xff]  ;;  %v2454_v2 = vld [vmem:[%s3132_s2 + $0x30] sm:$0xff] }
   0x2   :  { %182 = vmatpush.msra.mxu3 %v2446_v0  ;;  %98 = vmatpush.msra.mxu1 %v2082_v1  ;;  %v2081_v3 = vld [vmem:[%s3131_s1 + $0x40] sm:$0xff]  ;;  %v2468_v5 = vld [vmem:[%s3132_s2 + $0x28] sm:$0xff] }
   0x3   :  { %v2463_v4 = vld [vmem:[%s3130_s0] sm:$0xff] }
   0x4   :  { %183 = vmatpush.msra.mxu3 %v2454_v2  ;;  %99 = vmatpush.msra.mxu1 %v2081_v3  ;;  %v2474_v6 = vld [vmem:[%s3132_s2 + $0x20] sm:$0xff] }
   0x5   :  { %2085 = vmatmul.msk.f32.vlgmr.msra.gmra.mxu1 %vm51_vm0, %v2463_v4 }
   0x6   :  { %11 = vsyncpa [#allocation3], 0  ;;  %184 = vmatpush.msra.mxu3 %v2468_v5  ;;  %462 = vmatpush.msrb.mxu1 %v2446_v0  ;;  %v2404_v7 = vmov 0.0   ;;  %v2486_v8 = vld [vmem:[%s3130_s0 + $0x8] sm:$0xff]  ;;  %v2173_v9 = vld [vmem:[%s3133_s3 + $0x1] ss:$0 sm:$0xff]  ;;  %v24_v20 = vlaneseq }
   0x7   :  { %s2405_s14 = smov 64   ;;  %s2406_s15 = smov 32   ;;  %vm107_vm8 = vcmask 261120   ;;  %v2543_v63 = vld [vmem:[%s3132_s2 + $0x18] sm:$0xff]  ;;  %v2548_v1 = vld [vmem:[%s3132_s2 + $0x10] sm:$0xff]  ;;  %v44_v3 = vld [vmem:[%s3131_s1 + $0x8] sm:$0xff] }
   0x8   :  { %185 = vmatpush.msra.mxu3 %v2474_v6  ;;  %463 = vmatpush.msrb.mxu1 %v2454_v2  ;;  %v25_v22 = vand.u32 127, %v24_v20  ;;  %s2067_s29 = sshll.u32 %s3136_s6, 4  ;;  %s2068_s29 = int_to_ptr.hbm [resolvable:$true] %s2067_s29 }
   0x9   :  { %186 = vmatmul.f32.vlgmr.msra.gmra.mxu3 %v2404_v7  ;;  %123 = vmatpush.msra.mxu2 %v2543_v63 }
   0xa   :  { %320 = vmatpush.msrb.mxu3 %v2446_v0  ;;  %464 = vmatpush.msrb.mxu1 %v2468_v5  ;;  %vm26_vm1 = vcmp.ge.s32.totalorder %v25_v22, 64  ;;  %vm27_vm2 = vcmp.lt.s32.totalorder %v25_v22, 96 }
   0xb   :  { %vm2512_vm4 = vmand %vm26_vm1, %vm27_vm2  ;;  %72 = vmatpush.msra.mxu0 %v44_v3  ;;  %124 = vmatpush.msra.mxu2 %v2548_v1 }
   0xc   :  { %321 = vmatpush.msrb.mxu3 %v2454_v2  ;;  %465 = vmatpush.msrb.mxu1 %v2474_v6 }
   0xd   :  { %2086 = vmatmul.msk.f32.gmra.mxu1 %vm51_vm0, %v2486_v8 }
   0xe   :  { %322 = vmatpush.msrb.mxu3 %v2468_v5  ;;  %739 = vmatpush.msra.mxu1 %v2446_v0 }
  0x10   :  { %323 = vmatpush.msrb.mxu3 %v2474_v6  ;;  %740 = vmatpush.msra.mxu1 %v2454_v2 }
  0x12   :  { %604 = vmatpush.msra.mxu3 %v2446_v0  ;;  %741 = vmatpush.msra.mxu1 %v2468_v5 }
  0x14   :  { %605 = vmatpush.msra.mxu3 %v2454_v2  ;;  %742 = vmatpush.msra.mxu1 %v2474_v6 }
  0x16   :  { %606 = vmatpush.msra.mxu3 %v2468_v5 }
  0x18   :  { %607 = vmatpush.msra.mxu3 %v2474_v6 }
  0x82   :  { %v101_v10 = vpop.f32.mrf.mxu1 }
  0x83   :  { %v2507_v11 = vadd.f32 %v2173_v9, %v101_v10  ;;  %v2560_v10 = vld [vmem:[%s3132_s2 + $0x8] sm:$0xff] }
  0x84   :  { %125 = vmatpush.msra.mxu2 %v2560_v10 }
  0x8a   :  { %v104_v12 = vpop.f32.mrf.mxu1 }
  0x8b   :  { %v2509_v13 = vadd.f32 %v2173_v9, %v104_v12  ;;  %v43_v9 = vld [vmem:[%s3131_s1] sm:$0xff] }
  0x8c   :  { %v187_v14 = vpop.f32.mrf.mxu3  ;;  %v2566_v12 = vld [vmem:[%s3132_s2] sm:$0xff]  ;;  %73 = vmatpush.msra.mxu0 %v43_v9 }
  0x8d   :  { %v191_v15 = vrot.slane %v187_v14, 2  ;;  %2083 = vmatmul.msk.f32.vlgmr.msra.gmra.mxu0 %vm51_vm0, %v2463_v4  ;;  %126 = vmatpush.msra.mxu2 %v2566_v12 }
  0x8e   :  { %391 = vmatpush.msrb.mxu0 %v2543_v63  ;;  %127 = vmatmul.f32.vlgmr.msra.gmra.mxu2 %v2404_v7 }
  0x8f   :  { %v193_v16 = vadd.f32 %v191_v15, %v2509_v13  ;;  %249 = vmatpush.msrb.mxu2 %v2543_v63 }
  0x90   :  { %392 = vmatpush.msrb.mxu0 %v2548_v1 }
  0x91   :  { %v2088_v17 = vmul.f32 -1.442695, %v193_v16  ;;  %250 = vmatpush.msrb.mxu2 %v2548_v1 }
  0x92   :  { %393 = vmatpush.msrb.mxu0 %v2560_v10 }
  0x93   :  { %2178 = vpow2.f32 %v2088_v17  ;;  %251 = vmatpush.msrb.mxu2 %v2560_v10 }
  0x94   :  { %394 = vmatpush.msrb.mxu0 %v2566_v12 }
  0x95   :  { %2084 = vmatmul.msk.f32.gmra.mxu0 %vm51_vm0, %v2486_v8  ;;  %252 = vmatpush.msrb.mxu2 %v2566_v12 }
  0x96   :  { %672 = vmatpush.msra.mxu0 %v2543_v63 }
  0x97   :  { %533 = vmatpush.msra.mxu2 %v2543_v63 }
  0x98   :  { %673 = vmatpush.msra.mxu0 %v2548_v1 }
  0x99   :  { %v2179_v18 = vpop.eup %2178  ;;  %534 = vmatpush.msra.mxu2 %v2548_v1 }
  0x9a   :  { %v198_v19 = vadd.f32 1.0, %v2179_v18  ;;  %674 = vmatpush.msra.mxu0 %v2560_v10 }
  0x9b   :  { %535 = vmatpush.msra.mxu2 %v2560_v10 }
  0x9c   :  { %2180 = vrcp.f32 %v198_v19  ;;  %v210_v25 = vand.u32 2147483648, %v198_v19  ;;  %v208_v27 = vand.u32 2147483647, %v198_v19  ;;  %vm204_vm5 = vweird.f32 %v198_v19  ;;  %675 = vmatpush.msra.mxu0 %v2566_v12 }
  0x9d   :  { %2182 = vtanh.f32 %v193_v16  ;;  %536 = vmatpush.msra.mxu2 %v2566_v12 }
  0x9e   :  { %v211_v30 = vor.u32 1.1754944e-38, %v210_v25  ;;  %vm209_vm7 = vcmp.eq.f32.partialorder %v208_v27, 8.507059e+37 }
  0xa2   :  { %v2181_v21 = vpop.eup %2180 }
  0xa3   :  { %v200_v23 = vmul.f32 %v2181_v21, %v198_v19  ;;  %vm205_vm3 = vweird.f32 %v2181_v21  ;;  %v2183_v32 = vpop.eup %2182  ;;  %v2602_v19 = vld [vmem:[%s3133_s3] ss:$0 sm:$0xff] }
  0xa4   :  { %vm206_vm6 = vmor %vm204_vm5, %vm205_vm3 }
  0xa5   :  { %v201_v24 = vsub.f32 1.0, %v200_v23 }
  0xa7   :  { %v202_v26 = vmul.f32 %v2181_v21, %v201_v24 }
  0xa9   :  { %v203_v29 = vadd.f32 %v2181_v21, %v202_v26 }
  0xab   :  { %v207_v31 = vsel %vm206_vm6, %v2181_v21, %v203_v29 }
  0xac   :  { %v212_v33 = vsel %vm209_vm7, %v211_v30, %v207_v31 }
  0xad   :  { %v214_v34 = vsel %vm2512_vm4, %v2183_v32, %v212_v33 }
  0xae   :  { %217 = vrot.lane.b32.xlu0 %v214_v34, %s2405_s14  ;;  %v215_v37 = vmul.f32 0.0, %v214_v34 }
 0x10a   :  { %v75_v20 = vpop.f32.mrf.mxu0 }
 0x10b   :  { %v2605_v21 = vadd.f32 %v2602_v19, %v75_v20 }
 0x111   :  { %v128_v22 = vpop.f32.mrf.mxu2 }
 0x112   :  { %v131_v23 = vadd.f32 %v128_v22, %v2605_v21 }
 0x114   :  { %v2087_v24 = vmul.f32 -1.442695, %v131_v23 }
 0x120   :  { %v218_v35 = vpop.permute.xlu0 %217 }
 0x121   :  { %v220_v36 = vmul.f32 %v218_v35, %v214_v34 }
 0x123   :  { %222 = vrot.lane.b32.xlu0 %v220_v36, %s2406_s15 }
 0x195   :  { %v223_v38 = vpop.permute.xlu0 %222 }
 0x196   :  { %v2520_v39 = vadd.f32 %v223_v38, %v215_v37 }
 0x198   :  { %2184 = vtanh.f32 %v2520_v39  ;;  %v354_v14 = vrot.slane %v2520_v39, 2 }
 0x19e   :  { %v2185_v40 = vpop.eup %2184 }
 0x19f   :  { %228 = vrot.lane.b32.xlu1 %v2185_v40, %s2405_s14 }
 0x211   :  { %v229_v41 = vpop.permute.xlu1 %228 }
 0x212   :  { %v2524_v42 = vmul.f32 %v229_v41, %v214_v34 }
 0x214   :  { %v303_v43 = vrot.slane %v2524_v42, 6 }
 0x216   :  { %304 = vrot.lane.b32.xlu1 %v303_v43, %s2406_s15 }
 0x288   :  { %v305_v44 = vpop.permute.xlu1 %304 }
 0x289   :  { %2091 = vmatmul.msk.f32.vlgmr.msrb.gmra.mxu3 %vm107_vm8, %v305_v44 }
 0x28a   :  { %880 = vmatpush.msrb.mxu3 %v2446_v0 }
 0x28c   :  { %881 = vmatpush.msrb.mxu3 %v2454_v2 }
 0x28e   :  { %882 = vmatpush.msrb.mxu3 %v2468_v5 }
 0x290   :  { %883 = vmatpush.msrb.mxu3 %v2474_v6 }
 0x30c   :  { %v325_v45 = vpop.f32.mrf.mxu3 }
 0x30d   :  { %v329_v46 = vrot.slane %v325_v45, 4 }
 0x30f   :  { %v331_v47 = vadd.f32 %v329_v46, %v2509_v13 }
 0x311   :  { %v2092_v48 = vmul.f32 -1.442695, %v331_v47 }
 0x313   :  { %2186 = vpow2.f32 %v2092_v48 }
 0x319   :  { %v2187_v49 = vpop.eup %2186 }
 0x31a   :  { %v336_v50 = vadd.f32 1.0, %v2187_v49 }
 0x31c   :  { %2188 = vrcp.f32 %v336_v50  ;;  %v348_v54 = vand.u32 2147483648, %v336_v50  ;;  %v346_v56 = vand.u32 2147483647, %v336_v50  ;;  %vm342_vm10 = vweird.f32 %v336_v50 }
 0x31d   :  { %2190 = vtanh.f32 %v331_v47 }
 0x31e   :  { %v349_v58 = vor.u32 1.1754944e-38, %v348_v54  ;;  %vm347_vm12 = vcmp.eq.f32.partialorder %v346_v56, 8.507059e+37 }
 0x322   :  { %v2189_v51 = vpop.eup %2188 }
 0x323   :  { %v338_v52 = vmul.f32 %v2189_v51, %v336_v50  ;;  %vm343_vm9 = vweird.f32 %v2189_v51  ;;  %v2191_v60 = vpop.eup %2190 }
 0x324   :  { %vm344_vm11 = vmor %vm342_vm10, %vm343_vm9 }
 0x325   :  { %v339_v53 = vsub.f32 1.0, %v338_v52 }
 0x327   :  { %v340_v55 = vmul.f32 %v2189_v51, %v339_v53 }
 0x329   :  { %v341_v57 = vadd.f32 %v2189_v51, %v340_v55 }
 0x32b   :  { %v345_v59 = vsel %vm344_vm11, %v2189_v51, %v341_v57 }
 0x32c   :  { %v350_v61 = vsel %vm347_vm12, %v349_v58, %v345_v59 }
 0x32d   :  { %v2536_v62 = vsel %vm2512_vm4, %v2191_v60, %v350_v61 }
 0x32e   :  { %358 = vrot.lane.b32.xlu2 %v2536_v62, %s2405_s14  ;;  %v356_v15 = vmul.f32 %v354_v14, %v2536_v62 }
 0x388   :  { %v359_v4 = vpop.permute.xlu2 %358 }
 0x389   :  { %v361_v8 = vmul.f32 %v359_v4, %v2536_v62 }
 0x38b   :  { %363 = vrot.lane.b32.xlu2 %v361_v8, %s2406_s15 }
 0x3e5   :  { %v364_v16 = vpop.permute.xlu2 %363 }
 0x3e6   :  { %v2595_v17 = vadd.f32 %v364_v16, %v356_v15 }
 0x3e8   :  { %2192 = vtanh.f32 %v2595_v17 }
 0x3e9   :  { %2194 = vpow2.f32 %v2087_v24 }
 0x3ee   :  { %v2193_v18 = vpop.eup %2192 }
 0x3ef   :  { %369 = vrot.lane.b32.xlu0 %v2193_v18, %s2405_s14  ;;  %v2195_v25 = vpop.eup %2194 }
 0x3f0   :  { %v136_v26 = vadd.f32 1.0, %v2195_v25 }
 0x3f2   :  { %2196 = vrcp.f32 %v136_v26  ;;  %v148_v30 = vand.u32 2147483648, %v136_v26  ;;  %vm142_vm13 = vweird.f32 %v136_v26  ;;  %v146_v32 = vand.u32 2147483647, %v136_v26 }
 0x3f3   :  { %2198 = vtanh.f32 %v131_v23  ;;  %v496_v23 = vrot.slane %v2595_v17, 2 }
 0x3f4   :  { %v149_v34 = vor.u32 1.1754944e-38, %v148_v30  ;;  %vm147_vm0 = vcmp.eq.f32.partialorder %v146_v32, 8.507059e+37 }
 0x3f8   :  { %v2197_v27 = vpop.eup %2196 }
 0x3f9   :  { %v138_v29 = vmul.f32 %v2197_v27, %v136_v26  ;;  %vm143_vm14 = vweird.f32 %v2197_v27  ;;  %v2199_v36 = vpop.eup %2198 }
 0x3fa   :  { %vm144_vm15 = vmor %vm142_vm13, %vm143_vm14 }
 0x3fb   :  { %v139_v31 = vsub.f32 1.0, %v138_v29 }
 0x3fd   :  { %v140_v33 = vmul.f32 %v2197_v27, %v139_v31 }
 0x3ff   :  { %v141_v35 = vadd.f32 %v2197_v27, %v140_v33 }
 0x401   :  { %v145_v37 = vsel %vm144_vm15, %v2197_v27, %v141_v35 }
 0x402   :  { %v150_v38 = vsel %vm147_vm0, %v149_v34, %v145_v37 }
 0x403   :  { %v152_v39 = vsel %vm2512_vm4, %v2199_v36, %v150_v38 }
 0x404   :  { %155 = vrot.lane.b32.xlu2 %v152_v39, %s2405_s14  ;;  %v153_v57 = vmul.f32 0.0, %v152_v39 }
 0x45e   :  { %v156_v44 = vpop.permute.xlu2 %155 }
 0x45f   :  { %v158_v45 = vmul.f32 %v156_v44, %v152_v39 }
 0x461   :  { %v370_v40 = vpop.permute.xlu0 %369 }
 0x462   :  { %v2612_v41 = vmul.f32 %v370_v40, %v2536_v62 }
 0x464   :  { %v445_v43 = vrot.slane %v2612_v41, 4 }
 0x466   :  { %446 = vrot.lane.b32.xlu1 %v445_v43, %s2406_s15 }
 0x46e   :  { %160 = vrot.lane.b32.xlu1 %v158_v45, %s2406_s15 }
 0x4d8   :  { %v447_v46 = vpop.permute.xlu1 %446 }
 0x4d9   :  { %2095 = vmatmul.msk.f32.vlgmr.msrb.gmra.mxu1 %vm107_vm8, %v447_v46 }
 0x4da   :  { %1022 = vmatpush.msrb.mxu1 %v2446_v0 }
 0x4dc   :  { %1023 = vmatpush.msrb.mxu1 %v2454_v2 }
 0x4de   :  { %1024 = vmatpush.msrb.mxu1 %v2468_v5 }
 0x4e0   :  { %1025 = vmatpush.msrb.mxu1 %v2474_v6  ;;  %v161_v60 = vpop.permute.xlu1 %160 }
 0x4e1   :  { %v2623_v3 = vadd.f32 %v161_v60, %v153_v57 }
 0x556   :  { %v467_v47 = vpop.f32.mrf.mxu1 }
 0x557   :  { %v471_v48 = vrot.slane %v467_v47, 6 }
 0x559   :  { %v473_v49 = vadd.f32 %v471_v48, %v2509_v13 }
 0x55b   :  { %v2096_v50 = vmul.f32 -1.442695, %v473_v49 }
 0x55d   :  { %2200 = vpow2.f32 %v2096_v50 }
 0x563   :  { %v2201_v51 = vpop.eup %2200 }
 0x564   :  { %v478_v52 = vadd.f32 1.0, %v2201_v51 }
 0x566   :  { %2202 = vrcp.f32 %v478_v52  ;;  %v490_v56 = vand.u32 2147483648, %v478_v52  ;;  %v488_v59 = vand.u32 2147483647, %v478_v52  ;;  %vm484_vm2 = vweird.f32 %v478_v52 }
 0x567   :  { %2204 = vtanh.f32 %v473_v49 }
 0x568   :  { %v491_v62 = vor.u32 1.1754944e-38, %v490_v56  ;;  %vm489_vm5 = vcmp.eq.f32.partialorder %v488_v59, 8.507059e+37  ;;  %2206 = vtanh.f32 %v2623_v3 }
 0x56c   :  { %v2203_v53 = vpop.eup %2202 }
 0x56d   :  { %v480_v54 = vmul.f32 %v2203_v53, %v478_v52  ;;  %vm485_vm1 = vweird.f32 %v2203_v53  ;;  %v2205_v4 = vpop.eup %2204 }
 0x56e   :  { %vm486_vm3 = vmor %vm484_vm2, %vm485_vm1  ;;  %v2207_v15 = vpop.eup %2206 }
 0x56f   :  { %v481_v55 = vsub.f32 1.0, %v480_v54 }
 0x571   :  { %v482_v58 = vmul.f32 %v2203_v53, %v481_v55 }
 0x573   :  { %v483_v61 = vadd.f32 %v2203_v53, %v482_v58 }
 0x575   :  { %v487_v9 = vsel %vm486_vm3, %v2203_v53, %v483_v61 }
 0x576   :  { %v492_v8 = vsel %vm489_vm5, %v491_v62, %v487_v9  ;;  %v283_v62 = vrot.slane %v2623_v3, 6 }
 0x577   :  { %v494_v14 = vsel %vm2512_vm4, %v2205_v4, %v492_v8 }
 0x578   :  { %500 = vrot.lane.b32.xlu0 %v494_v14, %s2405_s14  ;;  %v498_v24 = vmul.f32 %v496_v23, %v494_v14 }
 0x580   :  { %166 = vrot.lane.b32.xlu0 %v2207_v15, %s2405_s14 }
 0x5ea   :  { %v501_v16 = vpop.permute.xlu0 %500 }
 0x5eb   :  { %v503_v18 = vmul.f32 %v501_v16, %v494_v14 }
 0x5ed   :  { %505 = vrot.lane.b32.xlu2 %v503_v18, %s2406_s15 }
 0x5f2   :  { %v167_v20 = vpop.permute.xlu0 %166 }
 0x5f3   :  { %v2631_v22 = vmul.f32 %v167_v20, %v152_v39 }
 0x5f5   :  { %233 = vrot.lane.b32.xlu2 %v2631_v22, %s2406_s15 }
 0x647   :  { %v506_v25 = vpop.permute.xlu2 %505 }
 0x648   :  { %v2636_v26 = vadd.f32 %v506_v25, %v498_v24 }
 0x64a   :  { %2208 = vtanh.f32 %v2636_v26 }
 0x64f   :  { %v234_v27 = vpop.permute.xlu2 %233 }
 0x650   :  { %v2209_v29 = vpop.eup %2208  ;;  %2089 = vmatmul.msk.f32.vlgmr.msrb.gmra.mxu2 %vm107_vm8, %v234_v27 }
 0x651   :  { %511 = vrot.lane.b32.xlu1 %v2209_v29, %s2405_s14  ;;  %809 = vmatpush.msrb.mxu2 %v2543_v63 }
 0x653   :  { %810 = vmatpush.msrb.mxu2 %v2548_v1 }
 0x655   :  { %811 = vmatpush.msrb.mxu2 %v2560_v10 }
 0x657   :  { %812 = vmatpush.msrb.mxu2 %v2566_v12 }
 0x6c3   :  { %v512_v17 = vpop.permute.xlu1 %511 }
 0x6c4   :  { %v2645_v30 = vmul.f32 %v512_v17, %v494_v14  ;;  %v635_v17 = vrot.slane %v2636_v26, 2 }
 0x6c6   :  { %v587_v31 = vrot.slane %v2645_v30, 2 }
 0x6c8   :  { %588 = vrot.lane.b32.xlu0 %v587_v31, %s2406_s15 }
 0x6d3   :  { %v254_v32 = vpop.f32.mrf.mxu2 }
 0x6d4   :  { %v258_v33 = vrot.slane %v254_v32, 6 }
 0x6d6   :  { %v260_v34 = vadd.f32 %v258_v33, %v2605_v21 }
 0x6d8   :  { %v2090_v35 = vmul.f32 -1.442695, %v260_v34 }
 0x6da   :  { %2210 = vpow2.f32 %v2090_v35 }
 0x6e0   :  { %v2211_v36 = vpop.eup %2210 }
 0x6e1   :  { %v265_v37 = vadd.f32 1.0, %v2211_v36 }
 0x6e3   :  { %2212 = vrcp.f32 %v265_v37  ;;  %v277_v43 = vand.u32 2147483648, %v265_v37  ;;  %v275_v45 = vand.u32 2147483647, %v265_v37  ;;  %vm271_vm7 = vweird.f32 %v265_v37 }
 0x6e4   :  { %2214 = vtanh.f32 %v260_v34 }
 0x6e5   :  { %v278_v47 = vor.u32 1.1754944e-38, %v277_v43  ;;  %vm276_vm10 = vcmp.eq.f32.partialorder %v275_v45, 8.507059e+37 }
 0x6e9   :  { %v2213_v38 = vpop.eup %2212 }
 0x6ea   :  { %v267_v39 = vmul.f32 %v2213_v38, %v265_v37  ;;  %vm272_vm6 = vweird.f32 %v2213_v38  ;;  %v2215_v49 = vpop.eup %2214  ;;  %v2685_v37 = vpop.f32.mrf.mxu0 }
 0x6eb   :  { %vm273_vm9 = vmor %vm271_vm7, %vm272_vm6 }
 0x6ec   :  { %v268_v40 = vsub.f32 1.0, %v267_v39 }
 0x6ee   :  { %v269_v44 = vmul.f32 %v2213_v38, %v268_v40 }
 0x6f0   :  { %v270_v46 = vadd.f32 %v2213_v38, %v269_v44 }
 0x6f2   :  { %v274_v48 = vsel %vm273_vm9, %v2213_v38, %v270_v46  ;;  %vm1246_vm9 = vcmask 1041408  }
 0x6f3   :  { %v279_v50 = vsel %vm276_vm10, %v278_v47, %v274_v48  ;;  %vm1248_vm10 = vcmask 1043456  }
 0x6f4   :  { %v281_v51 = vsel %vm2512_vm4, %v2215_v49, %v279_v50 }
 0x6f5   :  { %287 = vrot.lane.b32.xlu1 %v281_v51, %s2405_s14 }
 0x73a   :  { %v589_v52 = vpop.permute.xlu0 %588 }
 0x73b   :  { %2099 = vmatmul.msk.f32.vlgmr.msra.gmra.mxu3 %vm107_vm8, %v589_v52 }
 0x73c   :  { %1164 = vmatpush.msra.mxu3 %v2446_v0 }
 0x73e   :  { %1165 = vmatpush.msra.mxu3 %v2454_v2 }
 0x740   :  { %1166 = vmatpush.msra.mxu3 %v2468_v5 }
 0x742   :  { %1167 = vmatpush.msra.mxu3 %v2474_v6 }
 0x767   :  { %v288_v53 = vpop.permute.xlu1 %287 }
 0x768   :  { %v290_v54 = vmul.f32 %v288_v53, %v281_v51 }
 0x76a   :  { %292 = vrot.lane.b32.xlu0 %v290_v54, %s2406_s15 }
 0x7be   :  { %v609_v55 = vpop.f32.mrf.mxu3 }
 0x7bf   :  { %v612_v56 = vadd.f32 %v609_v55, %v2509_v13  ;;  %v285_v13 = vmul.f32 %v283_v62, %v281_v51 }
 0x7c1   :  { %v2100_v57 = vmul.f32 -1.442695, %v612_v56 }
 0x7c3   :  { %2216 = vpow2.f32 %v2100_v57 }
 0x7c9   :  { %v2217_v58 = vpop.eup %2216 }
 0x7ca   :  { %v617_v59 = vadd.f32 1.0, %v2217_v58 }
 0x7cc   :  { %2218 = vrcp.f32 %v617_v59  ;;  %v629_v2 = vand.u32 2147483648, %v617_v59  ;;  %v627_v6 = vand.u32 2147483647, %v617_v59  ;;  %vm623_vm12 = vweird.f32 %v617_v59 }
 0x7cd   :  { %2220 = vtanh.f32 %v612_v56 }
 0x7ce   :  { %v630_v4 = vor.u32 1.1754944e-38, %v629_v2  ;;  %vm628_vm14 = vcmp.eq.f32.partialorder %v627_v6, 8.507059e+37 }
 0x7d2   :  { %v2219_v60 = vpop.eup %2218 }
 0x7d3   :  { %v619_v0 = vmul.f32 %v2219_v60, %v617_v59  ;;  %vm624_vm11 = vweird.f32 %v2219_v60  ;;  %v2221_v14 = vpop.eup %2220 }
 0x7d4   :  { %vm625_vm13 = vmor %vm623_vm12, %vm624_vm11 }
 0x7d5   :  { %v620_v61 = vsub.f32 1.0, %v619_v0 }
 0x7d7   :  { %v621_v5 = vmul.f32 %v2219_v60, %v620_v61 }
 0x7d9   :  { %v622_v9 = vadd.f32 %v2219_v60, %v621_v5 }
 0x7db   :  { %v626_v8 = vsel %vm625_vm13, %v2219_v60, %v622_v9 }
 0x7dc   :  { %v293_v15 = vpop.permute.xlu0 %292  ;;  %v631_v16 = vsel %vm628_vm14, %v630_v4, %v626_v8 }
 0x7dd   :  { %v2661_v18 = vadd.f32 %v293_v15, %v285_v13  ;;  %v633_v20 = vsel %vm2512_vm4, %v2221_v14, %v631_v16 }
 0x7de   :  { %639 = vrot.lane.b32.xlu2 %v633_v20, %s2405_s14  ;;  %v637_v31 = vmul.f32 %v635_v17, %v633_v20 }
 0x7df   :  { %2222 = vtanh.f32 %v2661_v18 }
 0x7e5   :  { %v2223_v3 = vpop.eup %2222 }
 0x7e6   :  { %298 = vrot.lane.b32.xlu2 %v2223_v3, %s2405_s14  ;;  %v425_v3 = vrot.slane %v2661_v18, 6 }
 0x838   :  { %v640_v23 = vpop.permute.xlu2 %639 }
 0x839   :  { %v642_v24 = vmul.f32 %v640_v23, %v633_v20 }
 0x83b   :  { %644 = vrot.lane.b32.xlu1 %v642_v24, %s2406_s15 }
 0x840   :  { %v299_v25 = vpop.permute.xlu2 %298 }
 0x841   :  { %v2669_v27 = vmul.f32 %v299_v25, %v281_v51 }
 0x843   :  { %v374_v29 = vrot.slane %v2669_v27, 2 }
 0x845   :  { %375 = vrot.lane.b32.xlu1 %v374_v29, %s2406_s15 }
 0x8ad   :  { %v645_v32 = vpop.permute.xlu1 %644 }
 0x8ae   :  { %v2674_v33 = vadd.f32 %v645_v32, %v637_v31 }
 0x8b0   :  { %2224 = vtanh.f32 %v2674_v33 }
 0x8b6   :  { %v2225_v34 = vpop.eup %2224 }
 0x8b7   :  { %650 = vrot.lane.b32.xlu0 %v2225_v34, %s2405_s14  ;;  %v376_v35 = vpop.permute.xlu1 %375 }
 0x8b8   :  { %2093 = vmatmul.msk.f32.vlgmr.msrb.gmra.mxu0 %vm107_vm8, %v376_v35 }
 0x8b9   :  { %951 = vmatpush.msrb.mxu0 %v2543_v63 }
 0x8bb   :  { %952 = vmatpush.msrb.mxu0 %v2548_v1 }
 0x8bd   :  { %953 = vmatpush.msrb.mxu0 %v2560_v10 }
 0x8bf   :  { %954 = vmatpush.msrb.mxu0 %v2566_v12 }
 0x929   :  { %v651_v26 = vpop.permute.xlu0 %650 }
 0x92a   :  { %v2683_v36 = vmul.f32 %v651_v26, %v633_v20 }
 0x92c   :  { %723 = vrot.lane.b32.xlu2 %v2683_v36, %s2406_s15 }
 0x935   :  { %v396_v38 = vpop.f32.mrf.mxu0 }
 0x936   :  { %v400_v39 = vrot.slane %v396_v38, 4 }
 0x938   :  { %v402_v40 = vadd.f32 %v400_v39, %v2605_v21  ;;  %v1247_v39 = vsel %vm1246_vm9, %v2631_v22, %v2669_v27 }
 0x93a   :  { %v2094_v43 = vmul.f32 -1.442695, %v402_v40 }
 0x93c   :  { %2226 = vpow2.f32 %v2094_v43 }
 0x942   :  { %v2227_v44 = vpop.eup %2226 }
 0x943   :  { %v407_v45 = vadd.f32 1.0, %v2227_v44  ;;  %v773_v44 = vrot.slane %v2674_v33, 2 }
 0x945   :  { %2228 = vrcp.f32 %v407_v45  ;;  %v419_v49 = vand.u32 2147483648, %v407_v45  ;;  %v417_v51 = vand.u32 2147483647, %v407_v45  ;;  %vm413_vm0 = vweird.f32 %v407_v45 }
 0x946   :  { %2230 = vtanh.f32 %v402_v40 }
 0x947   :  { %v420_v53 = vor.u32 1.1754944e-38, %v419_v49  ;;  %vm418_vm2 = vcmp.eq.f32.partialorder %v417_v51, 8.507059e+37 }
 0x94b   :  { %v2229_v46 = vpop.eup %2228 }
 0x94c   :  { %v409_v47 = vmul.f32 %v2229_v46, %v407_v45  ;;  %vm414_vm15 = vweird.f32 %v2229_v46  ;;  %v2231_v55 = vpop.eup %2230 }
 0x94d   :  { %vm415_vm1 = vmor %vm413_vm0, %vm414_vm15 }
 0x94e   :  { %v410_v48 = vsub.f32 1.0, %v409_v47 }
 0x950   :  { %v411_v50 = vmul.f32 %v2229_v46, %v410_v48 }
 0x952   :  { %v412_v52 = vadd.f32 %v2229_v46, %v411_v50 }
 0x954   :  { %v416_v54 = vsel %vm415_vm1, %v2229_v46, %v412_v52 }
 0x955   :  { %v421_v56 = vsel %vm418_vm2, %v420_v53, %v416_v54 }
 0x956   :  { %v423_v57 = vsel %vm2512_vm4, %v2231_v55, %v421_v56 }
 0x957   :  { %429 = vrot.lane.b32.xlu0 %v423_v57, %s2405_s14  ;;  %v427_v17 = vmul.f32 %v425_v3, %v423_v57 }
 0x986   :  { %v724_v58 = vpop.permute.xlu2 %723 }
 0x987   :  { %2103 = vmatmul.msk.f32.vlgmr.msra.gmra.mxu1 %vm107_vm8, %v724_v58 }
 0x9c9   :  { %v430_v59 = vpop.permute.xlu0 %429 }
 0x9ca   :  { %v432_v60 = vmul.f32 %v430_v59, %v423_v57 }
 0x9cc   :  { %434 = vrot.lane.b32.xlu2 %v432_v60, %s2406_s15 }
 0xa04   :  { %v744_v0 = vpop.f32.mrf.mxu1 }
 0xa05   :  { %v748_v61 = vrot.slane %v744_v0, 2 }
 0xa07   :  { %v750_v2 = vadd.f32 %v748_v61, %v2507_v11 }
 0xa09   :  { %v2104_v5 = vmul.f32 -1.442695, %v750_v2 }
 0xa0b   :  { %2232 = vpow2.f32 %v2104_v5 }
 0xa11   :  { %v2233_v6 = vpop.eup %2232 }
 0xa12   :  { %v755_v62 = vadd.f32 1.0, %v2233_v6 }
 0xa14   :  { %2234 = vrcp.f32 %v755_v62  ;;  %v767_v8 = vand.u32 2147483648, %v755_v62  ;;  %v765_v15 = vand.u32 2147483647, %v755_v62  ;;  %vm761_vm5 = vweird.f32 %v755_v62 }
 0xa15   :  { %2236 = vtanh.f32 %v750_v2 }
 0xa16   :  { %v768_v20 = vor.u32 1.1754944e-38, %v767_v8  ;;  %vm766_vm7 = vcmp.eq.f32.partialorder %v765_v15, 8.507059e+37 }
 0xa1a   :  { %v2235_v9 = vpop.eup %2234 }
 0xa1b   :  { %v757_v4 = vmul.f32 %v2235_v9, %v755_v62  ;;  %vm762_vm3 = vweird.f32 %v2235_v9  ;;  %v2237_v24 = vpop.eup %2236 }
 0xa1c   :  { %vm763_vm6 = vmor %vm761_vm5, %vm762_vm3  ;;  %vm1250_vm3 = vcmask 1045504  }
 0xa1d   :  { %v758_v13 = vsub.f32 1.0, %v757_v4 }
 0xa1f   :  { %v759_v14 = vmul.f32 %v2235_v9, %v758_v13 }
 0xa21   :  { %v760_v16 = vadd.f32 %v2235_v9, %v759_v14 }
 0xa23   :  { %v764_v23 = vsel %vm763_vm6, %v2235_v9, %v760_v16 }
 0xa24   :  { %v769_v25 = vsel %vm766_vm7, %v768_v20, %v764_v23 }
 0xa25   :  { %v771_v29 = vsel %vm2512_vm4, %v2237_v24, %v769_v25 }
 0xa26   :  { %777 = vrot.lane.b32.xlu1 %v771_v29, %s2405_s14  ;;  %v435_v31 = vpop.permute.xlu2 %434  ;;  %v775_v45 = vmul.f32 %v773_v44, %v771_v29 }
 0xa27   :  { %v2700_v32 = vadd.f32 %v435_v31, %v427_v17 }
 0xa29   :  { %2238 = vtanh.f32 %v2700_v32  ;;  %v567_v17 = vrot.slane %v2700_v32, 6 }
 0xa2f   :  { %v2239_v34 = vpop.eup %2238 }
 0xa30   :  { %440 = vrot.lane.b32.xlu1 %v2239_v34, %s2405_s14 }
 0xa98   :  { %v778_v35 = vpop.permute.xlu1 %777 }
 0xa99   :  { %v780_v18 = vmul.f32 %v778_v35, %v771_v29 }
 0xa9b   :  { %782 = vrot.lane.b32.xlu0 %v780_v18, %s2406_s15 }
 0xaa2   :  { %v441_v26 = vpop.permute.xlu1 %440 }
 0xaa3   :  { %v443_v38 = vmul.f32 %v441_v26, %v423_v57 }
 0xaa5   :  { %v516_v40 = vrot.slane %v443_v38, 4  ;;  %v2709_v43 = vsel %vm1248_vm10, %v1247_v39, %v443_v38 }
 0xaa7   :  { %517 = vrot.lane.b32.xlu0 %v516_v40, %s2406_s15 }
 0xb0d   :  { %v783_v46 = vpop.permute.xlu0 %782 }
 0xb0e   :  { %v2713_v47 = vadd.f32 %v783_v46, %v775_v45 }
 0xb10   :  { %2240 = vtanh.f32 %v2713_v47 }
 0xb16   :  { %v2241_v48 = vpop.eup %2240 }
 0xb17   :  { %788 = vrot.lane.b32.xlu2 %v2241_v48, %s2405_s14 }
 0xb19   :  { %v518_v49 = vpop.permute.xlu0 %517 }
 0xb1a   :  { %2097 = vmatmul.msk.f32.vlgmr.msra.gmra.mxu2 %vm107_vm8, %v518_v49 }
 0xb1b   :  { %1093 = vmatpush.msra.mxu2 %v2543_v63 }
 0xb1d   :  { %1094 = vmatpush.msra.mxu2 %v2548_v1 }
 0xb1f   :  { %1095 = vmatpush.msra.mxu2 %v2560_v10 }
 0xb21   :  { %1096 = vmatpush.msra.mxu2 %v2566_v12 }
 0xb71   :  { %v789_v22 = vpop.permute.xlu2 %788 }
 0xb72   :  { %v2722_v27 = vmul.f32 %v789_v22, %v771_v29  ;;  %v914_v22 = vrot.slane %v2713_v47, 2  ;;  %v2759_v47 = vadd.f32 %v2602_v19, %v2685_v37 }
 0xb74   :  { %v863_v33 = vrot.slane %v2722_v27, 6 }
 0xb76   :  { %864 = vrot.lane.b32.xlu1 %v863_v33, %s2406_s15 }
 0xb9d   :  { %v538_v50 = vpop.f32.mrf.mxu2 }
 0xb9e   :  { %v542_v51 = vrot.slane %v538_v50, 2 }
 0xba0   :  { %v544_v52 = vadd.f32 %v542_v51, %v2605_v21 }
 0xba2   :  { %v2098_v53 = vmul.f32 -1.442695, %v544_v52 }
 0xba4   :  { %2242 = vpow2.f32 %v2098_v53 }
 0xbaa   :  { %v2243_v63 = vpop.eup %2242 }
 0xbab   :  { %v549_v54 = vadd.f32 1.0, %v2243_v63 }
 0xbad   :  { %2244 = vrcp.f32 %v549_v54  ;;  %v561_v12 = vand.u32 2147483648, %v549_v54  ;;  %v559_v57 = vand.u32 2147483647, %v549_v54  ;;  %vm555_vm12 = vweird.f32 %v549_v54 }
 0xbae   :  { %2246 = vtanh.f32 %v544_v52 }
 0xbaf   :  { %v562_v59 = vor.u32 1.1754944e-38, %v561_v12  ;;  %vm560_vm14 = vcmp.eq.f32.partialorder %v559_v57, 8.507059e+37 }
 0xbb3   :  { %v2245_v1 = vpop.eup %2244 }
 0xbb4   :  { %v551_v10 = vmul.f32 %v2245_v1, %v549_v54  ;;  %vm556_vm11 = vweird.f32 %v2245_v1  ;;  %v2247_v21 = vpop.eup %2246 }
 0xbb5   :  { %vm557_vm13 = vmor %vm555_vm12, %vm556_vm11 }
 0xbb6   :  { %v552_v55 = vsub.f32 1.0, %v551_v10 }
 0xbb8   :  { %v553_v56 = vmul.f32 %v2245_v1, %v552_v55 }
 0xbba   :  { %v554_v58 = vadd.f32 %v2245_v1, %v553_v56 }
 0xbbc   :  { %v558_v60 = vsel %vm557_vm13, %v2245_v1, %v554_v58 }
 0xbbd   :  { %v563_v0 = vsel %vm560_vm14, %v562_v59, %v558_v60 }
 0xbbe   :  { %v565_v61 = vsel %vm2512_vm4, %v2247_v21, %v563_v0 }
 0xbbf   :  { %571 = vrot.lane.b32.xlu2 %v565_v61, %s2405_s14  ;;  %v569_v26 = vmul.f32 %v567_v17, %v565_v61 }
 0xbe8   :  { %v865_v2 = vpop.permute.xlu1 %864 }
 0xbe9   :  { %2107 = vmatmul.msk.f32.vlgmr.msrb.gmra.mxu3 %vm107_vm8, %v865_v2 }
 0xc19   :  { %v572_v5 = vpop.permute.xlu2 %571 }
 0xc1a   :  { %v574_v6 = vmul.f32 %v572_v5, %v565_v61 }
 0xc1c   :  { %576 = vrot.lane.b32.xlu1 %v574_v6, %s2406_s15 }
 0xc6c   :  { %v885_v62 = vpop.f32.mrf.mxu3 }
 0xc6d   :  { %v889_v9 = vrot.slane %v885_v62, 4 }
 0xc6f   :  { %v891_v4 = vadd.f32 %v889_v9, %v2507_v11 }
 0xc71   :  { %v2108_v13 = vmul.f32 -1.442695, %v891_v4 }
 0xc73   :  { %2248 = vpow2.f32 %v2108_v13 }
 0xc79   :  { %v2249_v8 = vpop.eup %2248 }
 0xc7a   :  { %v896_v14 = vadd.f32 1.0, %v2249_v8 }
 0xc7c   :  { %2250 = vrcp.f32 %v896_v14  ;;  %v908_v3 = vand.u32 2147483648, %v896_v14  ;;  %v906_v24 = vand.u32 2147483647, %v896_v14  ;;  %vm902_vm0 = vweird.f32 %v896_v14 }
 0xc7d   :  { %2252 = vtanh.f32 %v891_v4 }
 0xc7e   :  { %v909_v29 = vor.u32 1.1754944e-38, %v908_v3  ;;  %vm907_vm2 = vcmp.eq.f32.partialorder %v906_v24, 8.507059e+37 }
 0xc82   :  { %v2251_v15 = vpop.eup %2250 }
 0xc83   :  { %v898_v16 = vmul.f32 %v2251_v15, %v896_v14  ;;  %vm903_vm15 = vweird.f32 %v2251_v15  ;;  %v2253_v34 = vpop.eup %2252 }
 0xc84   :  { %vm904_vm1 = vmor %vm902_vm0, %vm903_vm15 }
 0xc85   :  { %v899_v20 = vsub.f32 1.0, %v898_v16 }
 0xc87   :  { %v900_v23 = vmul.f32 %v2251_v15, %v899_v20 }
 0xc89   :  { %v901_v25 = vadd.f32 %v2251_v15, %v900_v23 }
 0xc8b   :  { %v905_v31 = vsel %vm904_vm1, %v2251_v15, %v901_v25 }
 0xc8c   :  { %v910_v35 = vsel %vm907_vm2, %v909_v29, %v905_v31 }
 0xc8d   :  { %v912_v18 = vsel %vm2512_vm4, %v2253_v34, %v910_v35 }
 0xc8e   :  { %918 = vrot.lane.b32.xlu0 %v912_v18, %s2405_s14  ;;  %v577_v38 = vpop.permute.xlu1 %576  ;;  %v916_v33 = vmul.f32 %v914_v22, %v912_v18 }
 0xc8f   :  { %v2737_v39 = vadd.f32 %v577_v38, %v569_v26 }
 0xc91   :  { %2254 = vtanh.f32 %v2737_v39  ;;  %v703_v31 = vrot.slane %v2737_v39, 6 }
 0xc97   :  { %v2255_v40 = vpop.eup %2254 }
 0xc98   :  { %582 = vrot.lane.b32.xlu0 %v2255_v40, %s2405_s14 }
 0xd00   :  { %v919_v44 = vpop.permute.xlu0 %918 }
 0xd01   :  { %v921_v32 = vmul.f32 %v919_v44, %v912_v18 }
 0xd03   :  { %923 = vrot.lane.b32.xlu2 %v921_v32, %s2406_s15 }
 0xd0a   :  { %v583_v45 = vpop.permute.xlu0 %582 }
 0xd0b   :  { %v585_v46 = vmul.f32 %v583_v45, %v565_v61 }
 0xd0d   :  { %v655_v48 = vrot.slane %v585_v46, 6  ;;  %v2744_v49 = vsel %vm1250_vm3, %v2709_v43, %v585_v46 }
 0xd0f   :  { %656 = vrot.lane.b32.xlu2 %v655_v48, %s2406_s15 }
 0xd5d   :  { %v924_v50 = vpop.permute.xlu2 %923 }
 0xd5e   :  { %v2748_v51 = vadd.f32 %v924_v50, %v916_v33 }
 0xd60   :  { %2256 = vtanh.f32 %v2748_v51  ;;  %v1056_v50 = vrot.slane %v2748_v51, 2 }
 0xd66   :  { %v2257_v52 = vpop.eup %2256 }
 0xd67   :  { %929 = vrot.lane.b32.xlu1 %v2257_v52, %s2405_s14 }
 0xd69   :  { %v657_v53 = vpop.permute.xlu2 %656 }
 0xd6a   :  { %2101 = vmatmul.msk.f32.vlgmr.msra.gmra.mxu0 %vm107_vm8, %v657_v53 }
 0xdd9   :  { %v930_v63 = vpop.permute.xlu1 %929 }
 0xdda   :  { %v2753_v54 = vmul.f32 %v930_v63, %v912_v18 }
 0xddc   :  { %v1005_v43 = vrot.slane %v2753_v54, 4 }
 0xdde   :  { %1006 = vrot.lane.b32.xlu0 %v1005_v43, %s2406_s15 }
 0xde7   :  { %v677_v1 = vpop.f32.mrf.mxu0 }
 0xde8   :  { %v680_v10 = vadd.f32 %v677_v1, %v2759_v47 }
 0xdea   :  { %v2102_v55 = vmul.f32 -1.442695, %v680_v10 }
 0xdec   :  { %2258 = vpow2.f32 %v2102_v55 }
 0xdf2   :  { %v2259_v12 = vpop.eup %2258 }
 0xdf3   :  { %v685_v56 = vadd.f32 1.0, %v2259_v12 }
 0xdf5   :  { %2260 = vrcp.f32 %v685_v56  ;;  %v697_v60 = vand.u32 2147483648, %v685_v56  ;;  %v695_v0 = vand.u32 2147483647, %v685_v56  ;;  %vm691_vm6 = vweird.f32 %v685_v56 }
 0xdf6   :  { %2262 = vtanh.f32 %v680_v10 }
 0xdf7   :  { %v698_v19 = vor.u32 1.1754944e-38, %v697_v60  ;;  %vm696_vm11 = vcmp.eq.f32.partialorder %v695_v0, 8.507059e+37 }
 0xdfb   :  { %v2261_v57 = vpop.eup %2260 }
 0xdfc   :  { %v687_v58 = vmul.f32 %v2261_v57, %v685_v56  ;;  %vm692_vm5 = vweird.f32 %v2261_v57  ;;  %v2263_v2 = vpop.eup %2262 }
 0xdfd   :  { %vm693_vm7 = vmor %vm691_vm6, %vm692_vm5 }
 0xdfe   :  { %v688_v59 = vsub.f32 1.0, %v687_v58 }
 0xe00   :  { %v689_v21 = vmul.f32 %v2261_v57, %v688_v59 }
 0xe02   :  { %v690_v61 = vadd.f32 %v2261_v57, %v689_v21 }
 0xe04   :  { %v694_v37 = vsel %vm693_vm7, %v2261_v57, %v690_v61 }
 0xe05   :  { %v699_v5 = vsel %vm696_vm11, %v698_v19, %v694_v37 }
 0xe06   :  { %v701_v6 = vsel %vm2512_vm4, %v2263_v2, %v699_v5 }
 0xe07   :  { %707 = vrot.lane.b32.xlu1 %v701_v6, %s2405_s14  ;;  %v705_v18 = vmul.f32 %v703_v31, %v701_v6 }
 0xe50   :  { %v1007_v62 = vpop.permute.xlu0 %1006 }
 0xe51   :  { %2111 = vmatmul.msk.f32.vlgmr.msrb.gmra.mxu1 %vm107_vm8, %v1007_v62 }
 0xe79   :  { %v708_v9 = vpop.permute.xlu1 %707 }
 0xe7a   :  { %v710_v4 = vmul.f32 %v708_v9, %v701_v6 }
 0xe7c   :  { %712 = vrot.lane.b32.xlu0 %v710_v4, %s2406_s15 }
 0xece   :  { %v1027_v13 = vpop.f32.mrf.mxu1 }
 0xecf   :  { %v1031_v8 = vrot.slane %v1027_v13, 6 }
 0xed1   :  { %v1033_v14 = vadd.f32 %v1031_v8, %v2507_v11 }
 0xed3   :  { %v2112_v15 = vmul.f32 -1.442695, %v1033_v14 }
 0xed5   :  { %2264 = vpow2.f32 %v2112_v15 }
 0xedb   :  { %v2265_v16 = vpop.eup %2264 }
 0xedc   :  { %v1038_v20 = vadd.f32 1.0, %v2265_v16 }
 0xede   :  { %2266 = vrcp.f32 %v1038_v20  ;;  %v1050_v25 = vand.u32 2147483648, %v1038_v20  ;;  %v1048_v17 = vand.u32 2147483647, %v1038_v20  ;;  %vm1044_vm13 = vweird.f32 %v1038_v20 }
 0xedf   :  { %2268 = vtanh.f32 %v1033_v14 }
 0xee0   :  { %v1051_v35 = vor.u32 1.1754944e-38, %v1050_v25  ;;  %vm1049_vm15 = vcmp.eq.f32.partialorder %v1048_v17, 8.507059e+37 }
 0xee4   :  { %v2267_v3 = vpop.eup %2266 }
 0xee5   :  { %v1040_v23 = vmul.f32 %v2267_v3, %v1038_v20  ;;  %vm1045_vm12 = vweird.f32 %v2267_v3  ;;  %v2269_v38 = vpop.eup %2268 }
 0xee6   :  { %vm1046_vm14 = vmor %vm1044_vm13, %vm1045_vm12 }
 0xee7   :  { %v1041_v24 = vsub.f32 1.0, %v1040_v23 }
 0xee9   :  { %v1042_v29 = vmul.f32 %v2267_v3, %v1041_v24 }
 0xeeb   :  { %v1043_v34 = vadd.f32 %v2267_v3, %v1042_v29 }
 0xeed   :  { %v1047_v26 = vsel %vm1046_vm14, %v2267_v3, %v1043_v34 }
 0xeee   :  { %v713_v40 = vpop.permute.xlu0 %712  ;;  %v1052_v44 = vsel %vm1049_vm15, %v1051_v35, %v1047_v26 }
 0xeef   :  { %v2769_v32 = vadd.f32 %v713_v40, %v705_v18  ;;  %v1054_v45 = vsel %vm2512_vm4, %v2269_v38, %v1052_v44 }
 0xef0   :  { %1060 = vrot.lane.b32.xlu2 %v1054_v45, %s2405_s14  ;;  %v1058_v52 = vmul.f32 %v1056_v50, %v1054_v45 }
 0xef1   :  { %2270 = vtanh.f32 %v2769_v32  ;;  %v843_v18 = vrot.slane %v2769_v32, 6 }
 0xef7   :  { %v2271_v39 = vpop.eup %2270 }
 0xef8   :  { %718 = vrot.lane.b32.xlu2 %v2271_v39, %s2405_s14 }
 0xf4a   :  { %v1061_v46 = vpop.permute.xlu2 %1060 }
 0xf4b   :  { %v1063_v48 = vmul.f32 %v1061_v46, %v1054_v45 }
 0xf4d   :  { %1065 = vrot.lane.b32.xlu1 %v1063_v48, %s2406_s15 }
 0xf52   :  { %v719_v22 = vpop.permute.xlu2 %718 }
 0xf53   :  { %v2777_v33 = vmul.f32 %v719_v22, %v701_v6 }
 0xf55   :  { %793 = vrot.lane.b32.xlu1 %v2777_v33, %s2406_s15 }
 0xfbf   :  { %v1066_v53 = vpop.permute.xlu1 %1065 }
 0xfc0   :  { %v2782_v63 = vadd.f32 %v1066_v53, %v1058_v52 }
 0xfc2   :  { %2272 = vtanh.f32 %v2782_v63 }
 0xfc7   :  { %v794_v43 = vpop.permute.xlu1 %793 }
 0xfc8   :  { %v2273_v1 = vpop.eup %2272  ;;  %2105 = vmatmul.msk.f32.vlgmr.msrb.gmra.mxu2 %vm107_vm8, %v794_v43 }
 0xfc9   :  { %1071 = vrot.lane.b32.xlu0 %v2273_v1, %s2405_s14  ;;  %v2130_v1 = vld [vmem:[%s3131_s1 + $0x98] sm:$0xff] }
 0xfca   :  { %1316 = vmatpush.msra.mxu1 %v2130_v1  ;;  %v2932_v1 = vld [vmem:[%s3133_s3 + $0x2] ss:$0 sm:$0xff] }
0x103b   :  { %v1072_v10 = vpop.permute.xlu0 %1071 }
0x103c   :  { %v2787_v55 = vmul.f32 %v1072_v10, %v1054_v45  ;;  %v2138_v10 = vld [vmem:[%s3131_s1 + $0xd8] sm:$0xff] }
0x103d   :  { %1366 = vmatpush.msrb.mxu3 %v2138_v10 }
0x103e   :  { %v1147_v12 = vrot.slane %v2787_v55, 2 }
0x1040   :  { %1148 = vrot.lane.b32.xlu2 %v1147_v12, %s2406_s15  ;;  %v2129_v12 = vld [vmem:[%s3131_s1 + $0x90] sm:$0xff] }
0x1041   :  { %1317 = vmatpush.msra.mxu1 %v2129_v12 }
0x104b   :  { %v814_v51 = vpop.f32.mrf.mxu2 }
0x104c   :  { %v818_v56 = vrot.slane %v814_v51, 6  ;;  %v2137_v51 = vld [vmem:[%s3131_s1 + $0xd0] sm:$0xff] }
0x104d   :  { %1367 = vmatpush.msrb.mxu3 %v2137_v51 }
0x104e   :  { %v820_v57 = vadd.f32 %v818_v56, %v2759_v47  ;;  %v2136_v56 = vld [vmem:[%s3131_s1 + $0xc8] sm:$0xff] }
0x104f   :  { %1368 = vmatpush.msrb.mxu3 %v2136_v56 }
0x1050   :  { %v2106_v58 = vmul.f32 -1.442695, %v820_v57 }
0x1052   :  { %2274 = vpow2.f32 %v2106_v58  ;;  %v2135_v58 = vld [vmem:[%s3131_s1 + $0xc0] sm:$0xff] }
0x1053   :  { %1369 = vmatpush.msrb.mxu3 %v2135_v58 }
0x1058   :  { %v2275_v59 = vpop.eup %2274 }
0x1059   :  { %v825_v60 = vadd.f32 1.0, %v2275_v59  ;;  %v1195_v59 = vrot.slane %v2782_v63, 2 }
0x105b   :  { %2276 = vrcp.f32 %v825_v60  ;;  %v837_v19 = vand.u32 2147483648, %v825_v60  ;;  %v835_v2 = vand.u32 2147483647, %v825_v60  ;;  %vm831_vm1 = vweird.f32 %v825_v60 }
0x105c   :  { %2278 = vtanh.f32 %v820_v57  ;;  %v2127_v57 = vld [vmem:[%s3131_s1 + $0x80] sm:$0xff] }
0x105d   :  { %v838_v6 = vor.u32 1.1754944e-38, %v837_v19  ;;  %vm836_vm5 = vcmp.eq.f32.partialorder %v835_v2, 8.507059e+37 }
0x1061   :  { %v2277_v21 = vpop.eup %2276 }
0x1062   :  { %v827_v0 = vmul.f32 %v2277_v21, %v825_v60  ;;  %vm832_vm0 = vweird.f32 %v2277_v21  ;;  %v2279_v9 = vpop.eup %2278 }
0x1063   :  { %vm833_vm2 = vmor %vm831_vm1, %vm832_vm0 }
0x1064   :  { %v828_v61 = vsub.f32 1.0, %v827_v0 }
0x1066   :  { %v829_v37 = vmul.f32 %v2277_v21, %v828_v61 }
0x1068   :  { %v830_v5 = vadd.f32 %v2277_v21, %v829_v37  ;;  %v1258_v37 = vsel %vm1246_vm9, %v2683_v36, %v2645_v30 }
0x1069   :  { %v1259_v2 = vsel %vm1248_vm10, %v1258_v37, %v2612_v41 }
0x106a   :  { %v834_v62 = vsel %vm833_vm2, %v2277_v21, %v830_v5  ;;  %v1260_v63 = vsel %vm1250_vm3, %v1259_v2, %v2524_v42 }
0x106b   :  { %v839_v4 = vsel %vm836_vm5, %v838_v6, %v834_v62 }
0x106c   :  { %v841_v13 = vsel %vm2512_vm4, %v2279_v9, %v839_v4  ;;  %v2134_v4 = vld [vmem:[%s3131_s1 + $0xb8] sm:$0xff] }
0x106d   :  { %847 = vrot.lane.b32.xlu0 %v841_v13, %s2405_s14  ;;  %1283 = vmatpush.msra.mxu0 %v2134_v4 }
0x109a   :  { %v1149_v8 = vpop.permute.xlu2 %1148 }
0x109b   :  { %2115 = vmatmul.msk.f32.vlgmr.msra.gmra.mxu3 %vm107_vm8, %v1149_v8  ;;  %v2131_v8 = vld [vmem:[%s3131_s1 + $0xa0] sm:$0xff] }
0x10df   :  { %v848_v14 = vpop.permute.xlu0 %847 }
0x10e0   :  { %v850_v15 = vmul.f32 %v848_v14, %v841_v13 }
0x10e2   :  { %852 = vrot.lane.b32.xlu2 %v850_v15, %s2406_s15 }
0x111e   :  { %v1169_v16 = vpop.f32.mrf.mxu3 }
0x111f   :  { %v1172_v20 = vadd.f32 %v1169_v16, %v2507_v11  ;;  %v845_v11 = vmul.f32 %v843_v18, %v841_v13 }
0x1121   :  { %v2116_v3 = vmul.f32 -1.442695, %v1172_v20 }
0x1123   :  { %2280 = vpow2.f32 %v2116_v3 }
0x1129   :  { %v2281_v23 = vpop.eup %2280 }
0x112a   :  { %v1177_v24 = vadd.f32 1.0, %v2281_v23 }
0x112c   :  { %2282 = vrcp.f32 %v1177_v24  ;;  %v1189_v31 = vand.u32 2147483648, %v1177_v24  ;;  %v1187_v35 = vand.u32 2147483647, %v1177_v24  ;;  %vm1183_vm7 = vweird.f32 %v1177_v24 }
0x112d   :  { %2284 = vtanh.f32 %v1172_v20 }
0x112e   :  { %v1190_v38 = vor.u32 1.1754944e-38, %v1189_v31  ;;  %vm1188_vm12 = vcmp.eq.f32.partialorder %v1187_v35, 8.507059e+37 }
0x1132   :  { %v2283_v25 = vpop.eup %2282 }
0x1133   :  { %v1179_v29 = vmul.f32 %v2283_v25, %v1177_v24  ;;  %vm1184_vm6 = vweird.f32 %v2283_v25  ;;  %v2285_v44 = vpop.eup %2284 }
0x1134   :  { %vm1185_vm11 = vmor %vm1183_vm7, %vm1184_vm6 }
0x1135   :  { %v1180_v17 = vsub.f32 1.0, %v1179_v29 }
0x1137   :  { %v1181_v34 = vmul.f32 %v2283_v25, %v1180_v17 }
0x1139   :  { %v1182_v26 = vadd.f32 %v2283_v25, %v1181_v34 }
0x113b   :  { %v1186_v40 = vsel %vm1185_vm11, %v2283_v25, %v1182_v26 }
0x113c   :  { %v853_v45 = vpop.permute.xlu2 %852  ;;  %v1191_v39 = vsel %vm1188_vm12, %v1190_v38, %v1186_v40  ;;  %v2879_v38 = vld [vmem:[%s3132_s2 + $0x58] sm:$0xff]  ;;  %v2893_v40 = vld [vmem:[%s3132_s2 + $0x48] sm:$0xff] }
0x113d   :  { %v2799_v46 = vadd.f32 %v853_v45, %v845_v11  ;;  %v1193_v48 = vsel %vm2512_vm4, %v2285_v44, %v1191_v39  ;;  %v2884_v11 = vld [vmem:[%s3132_s2 + $0x50] sm:$0xff]  ;;  %1589 = vmatpush.msra.mxu3 %v2879_v38  ;;  %v2898_v44 = vld [vmem:[%s3132_s2 + $0x40] sm:$0xff] }
0x113e   :  { %1199 = vrot.lane.b32.xlu1 %v1193_v48, %s2405_s14  ;;  %v1197_v60 = vmul.f32 %v1195_v59, %v1193_v48 }
0x113f   :  { %2286 = vtanh.f32 %v2799_v46  ;;  %1590 = vmatpush.msra.mxu3 %v2884_v11 }
0x1141   :  { %1591 = vmatpush.msra.mxu3 %v2893_v40 }
0x1143   :  { %1592 = vmatpush.msra.mxu3 %v2898_v44 }
0x1145   :  { %v2287_v32 = vpop.eup %2286 }
0x1146   :  { %858 = vrot.lane.b32.xlu1 %v2287_v32, %s2405_s14 }
0x11b0   :  { %v1200_v22 = vpop.permute.xlu1 %1199 }
0x11b1   :  { %v1202_v50 = vmul.f32 %v1200_v22, %v1193_v48 }
0x11b3   :  { %1204 = vrot.lane.b32.xlu0 %v1202_v50, %s2406_s15 }
0x11b8   :  { %v859_v52 = vpop.permute.xlu1 %858 }
0x11b9   :  { %v2807_v53 = vmul.f32 %v859_v52, %v841_v13  ;;  %v2133_v13 = vld [vmem:[%s3131_s1 + $0xb0] sm:$0xff] }
0x11ba   :  { %1284 = vmatpush.msra.mxu0 %v2133_v13 }
0x11bb   :  { %v934_v43 = vrot.slane %v2807_v53, 2 }
0x11bd   :  { %935 = vrot.lane.b32.xlu0 %v934_v43, %s2406_s15 }
0x11c5   :  { %1296 = vrot.lane.b32.xlu0 %v2744_v49, %s2406_s15  ;;  %v2128_v49 = vld [vmem:[%s3131_s1 + $0x88] sm:$0xff] }
0x11c6   :  { %1318 = vmatpush.msra.mxu1 %v2128_v49 }
0x11c8   :  { %1319 = vmatpush.msra.mxu1 %v2127_v57 }
0x1225   :  { %v1205_v21 = vpop.permute.xlu0 %1204 }
0x1226   :  { %v1207_v0 = vadd.f32 %v1205_v21, %v1197_v60 }
0x1228   :  { %2288 = vtanh.f32 %v1207_v0 }
0x122e   :  { %v2289_v61 = vpop.eup %2288 }
0x122f   :  { %1210 = vrot.lane.b32.xlu2 %v2289_v61, %s2405_s14  ;;  %v936_v19 = vpop.permute.xlu0 %935 }
0x1230   :  { %2109 = vmatmul.msk.f32.vlgmr.msrb.gmra.mxu0 %vm107_vm8, %v936_v19 }
0x1237   :  { %1265 = vrot.lane.b32.xlu2 %v1260_v63, %s2406_s15  ;;  %v1297_v5 = vpop.permute.xlu0 %1296 }
0x1238   :  { %2145 = vmatmul.msk.f32.vlgmr.msra.gmra.mxu1 %vm107_vm8, %v1297_v5  ;;  %2149 = vmatmul.msk.f32.vlgmr.msrb.gmra.mxu3 %vm107_vm8, %v1297_v5 }
0x1239   :  { %1869 = vmatpush.msrb.mxu3 %v2879_v38 }
0x123b   :  { %1870 = vmatpush.msrb.mxu3 %v2884_v11 }
0x123d   :  { %1871 = vmatpush.msrb.mxu3 %v2893_v40 }
0x123f   :  { %1872 = vmatpush.msrb.mxu3 %v2898_v44 }
0x1289   :  { %v1211_v6 = vpop.permute.xlu2 %1210 }
0x128a   :  { %v1213_v62 = vmul.f32 %v1211_v6, %v1193_v48 }
0x128c   :  { %v1255_v30 = vsel %vm1246_vm9, %v1213_v62, %v2787_v55  ;;  %v985_v62 = vrot.slane %v2799_v46, 6  ;;  %v1252_v46 = vsel %vm1246_vm9, %v2777_v33, %v2807_v53  ;;  %v2139_v33 = vld [vmem:[%s3131_s1 + $0xe0] sm:$0xff] }
0x128d   :  { %v1256_v36 = vsel %vm1248_vm10, %v1255_v30, %v2753_v54  ;;  %v2132_v54 = vld [vmem:[%s3131_s1 + $0xa8] sm:$0xff] }
0x128e   :  { %v1257_v41 = vsel %vm1250_vm3, %v1256_v36, %v2722_v27  ;;  %1285 = vmatpush.msra.mxu0 %v2132_v54 }
0x128f   :  { %1263 = vrot.lane.b32.xlu1 %v1257_v41, %s2406_s15 }
0x1290   :  { %1286 = vmatpush.msra.mxu0 %v2131_v8  ;;  %v2142_v8 = vld [vmem:[%s3131_s1 + $0xf8] sm:$0xff] }
0x1291   :  { %v2915_v39 = vpop.permute.xlu2 %1265  ;;  %1344 = vmatpush.msrb.mxu2 %v2142_v8 }
0x1292   :  { %1392 = vmatpush.msrb.mxu0 %v2879_v38 }
0x1294   :  { %1393 = vmatpush.msrb.mxu0 %v2884_v11 }
0x1296   :  { %1394 = vmatpush.msrb.mxu0 %v2893_v40 }
0x1298   :  { %1395 = vmatpush.msrb.mxu0 %v2898_v44 }
0x12ad   :  { %v956_v42 = vpop.f32.mrf.mxu0 }
0x12ae   :  { %v960_v9 = vrot.slane %v956_v42, 4 }
0x12b0   :  { %v962_v55 = vadd.f32 %v960_v9, %v2759_v47 }
0x12b2   :  { %v2110_v27 = vmul.f32 -1.442695, %v962_v55 }
0x12b4   :  { %2290 = vpow2.f32 %v2110_v27 }
0x12b5   :  { %v1321_v52 = vpop.f32.mrf.mxu1 }
0x12ba   :  { %v2291_v14 = vpop.eup %2290 }
0x12bb   :  { %v967_v15 = vadd.f32 1.0, %v2291_v14  ;;  %v1371_v16 = vpop.f32.mrf.mxu3  ;;  %v2141_v14 = vld [vmem:[%s3131_s1 + $0xf0] sm:$0xff] }
0x12bc   :  { %1345 = vmatpush.msrb.mxu2 %v2141_v14 }
0x12bd   :  { %2292 = vrcp.f32 %v967_v15  ;;  %v979_v24 = vand.u32 2147483648, %v967_v15  ;;  %v977_v29 = vand.u32 2147483647, %v967_v15  ;;  %vm973_vm14 = vweird.f32 %v967_v15 }
0x12be   :  { %2294 = vtanh.f32 %v962_v55 }
0x12bf   :  { %v980_v31 = vor.u32 1.1754944e-38, %v979_v24  ;;  %vm978_vm0 = vcmp.eq.f32.partialorder %v977_v29, 8.507059e+37 }
0x12c3   :  { %v2293_v20 = vpop.eup %2292 }
0x12c4   :  { %v969_v3 = vmul.f32 %v2293_v20, %v967_v15  ;;  %vm974_vm13 = vweird.f32 %v2293_v20  ;;  %v2295_v35 = vpop.eup %2294  ;;  %v2140_v15 = vld [vmem:[%s3131_s1 + $0xe8] sm:$0xff] }
0x12c5   :  { %vm975_vm15 = vmor %vm973_vm14, %vm974_vm13  ;;  %1346 = vmatpush.msrb.mxu2 %v2140_v15 }
0x12c6   :  { %v970_v23 = vsub.f32 1.0, %v969_v3 }
0x12c7   :  { %1347 = vmatpush.msrb.mxu2 %v2139_v33 }
0x12c8   :  { %v971_v25 = vmul.f32 %v2293_v20, %v970_v23 }
0x12ca   :  { %v972_v17 = vadd.f32 %v2293_v20, %v971_v25 }
0x12cc   :  { %v976_v34 = vsel %vm975_vm15, %v2293_v20, %v972_v17 }
0x12cd   :  { %v981_v18 = vsel %vm978_vm0, %v980_v31, %v976_v34 }
0x12ce   :  { %v2872_v26 = vsel %vm2512_vm4, %v2295_v35, %v981_v18 }
0x12cf   :  { %989 = vrot.lane.b32.xlu1 %v2872_v26, %s2405_s14  ;;  %v987_v30 = vmul.f32 %v985_v62, %v2872_v26 }
0x1301   :  { %v2908_v45 = vpop.permute.xlu1 %1263 }
0x1302   :  { %2143 = vmatmul.msk.f32.vlgmr.msra.gmra.mxu0 %vm107_vm8, %v2908_v45 }
0x1303   :  { %1660 = vmatpush.msra.mxu0 %v2879_v38 }
0x1305   :  { %1661 = vmatpush.msra.mxu0 %v2884_v11 }
0x1307   :  { %1662 = vmatpush.msra.mxu0 %v2893_v40 }
0x1309   :  { %1663 = vmatpush.msra.mxu0 %v2898_v44 }
0x130a   :  { %2144 = vmatmul.msk.f32.gmra.mxu0 %vm107_vm8, %v2915_v39 }
0x1312   :  { %1396 = vmatmul.f32.vlgmr.msrb.gmra.mxu0 %v2404_v7 }
0x1313   :  { %1940 = vmatpush.msrb.mxu0 %v2879_v38 }
0x1315   :  { %1941 = vmatpush.msrb.mxu0 %v2884_v11 }
0x1317   :  { %1942 = vmatpush.msrb.mxu0 %v2893_v40 }
0x1319   :  { %1943 = vmatpush.msrb.mxu0 %v2898_v44 }
0x1341   :  { %v990_v48 = vpop.permute.xlu1 %989 }
0x1342   :  { %v992_v32 = vmul.f32 %v990_v48, %v2872_v26 }
0x1344   :  { %994 = vrot.lane.b32.xlu0 %v992_v32, %s2406_s15 }
0x137f   :  { %v1288_v22 = vpop.f32.mrf.mxu0 }
0x1380   :  { %v1322_v43 = vadd.f32 %v1321_v52, %v1288_v22 }
0x1382   :  { %v2935_v10 = vadd.f32 %v2932_v1, %v1322_v43 }
0x1387   :  { %v2927_v50 = vpop.f32.mrf.mxu0 }
0x138f   :  { %v1397_v12 = vpop.f32.mrf.mxu0 }
0x1390   :  { %v1400_v51 = vadd.f32 %v1397_v12, %v2935_v10 }
0x1392   :  { %v2151_v49 = vmul.f32 -1.442695, %v1400_v51 }
0x1394   :  { %2296 = vpow2.f32 %v2151_v49 }
0x139a   :  { %v2297_v56 = vpop.eup %2296 }
0x139b   :  { %v1405_v57 = vadd.f32 1.0, %v2297_v56 }
0x139d   :  { %2298 = vrcp.f32 %v1405_v57  ;;  %v1417_v21 = vand.u32 2147483648, %v1405_v57  ;;  %v1415_v61 = vand.u32 2147483647, %v1405_v57  ;;  %vm1411_vm2 = vweird.f32 %v1405_v57 }
0x139e   :  { %2300 = vtanh.f32 %v1400_v51 }
0x139f   :  { %v1418_v37 = vor.u32 1.1754944e-38, %v1417_v21  ;;  %vm1416_vm6 = vcmp.eq.f32.partialorder %v1415_v61, 8.507059e+37 }
0x13a3   :  { %v2299_v58 = vpop.eup %2298 }
0x13a4   :  { %v1407_v59 = vmul.f32 %v2299_v58, %v1405_v57  ;;  %vm1412_vm1 = vweird.f32 %v2299_v58  ;;  %v2301_v63 = vpop.eup %2300 }
0x13a5   :  { %vm1413_vm5 = vmor %vm1411_vm2, %vm1412_vm1 }
0x13a6   :  { %v1408_v60 = vsub.f32 1.0, %v1407_v59 }
0x13a8   :  { %v1409_v0 = vmul.f32 %v2299_v58, %v1408_v60 }
0x13aa   :  { %v1410_v19 = vadd.f32 %v2299_v58, %v1409_v0 }
0x13ac   :  { %v1414_v2 = vsel %vm1413_vm5, %v2299_v58, %v1410_v19 }
0x13ad   :  { %v1419_v5 = vsel %vm1416_vm6, %v1418_v37, %v1414_v2 }
0x13ae   :  { %v1421_v6 = vsel %vm2512_vm4, %v2301_v63, %v1419_v5 }
0x13af   :  { %1424 = vrot.lane.b32.xlu2 %v1421_v6, %s2405_s14  ;;  %v1422_v53 = vmul.f32 0.0, %v1421_v6 }
0x13b6   :  { %v995_v36 = vpop.permute.xlu0 %994 }
0x13b7   :  { %v2943_v41 = vadd.f32 %v995_v36, %v987_v30 }
0x13b9   :  { %2302 = vtanh.f32 %v2943_v41 }
0x13bf   :  { %v2303_v42 = vpop.eup %2302 }
0x13c0   :  { %1000 = vrot.lane.b32.xlu2 %v2303_v42, %s2405_s14 }
0x1409   :  { %v1425_v9 = vpop.permute.xlu2 %1424 }
0x140a   :  { %v1427_v4 = vmul.f32 %v1425_v9, %v1421_v6 }
0x140c   :  { %1429 = vrot.lane.b32.xlu1 %v1427_v4, %s2406_s15 }
0x141a   :  { %v1001_v13 = vpop.permute.xlu2 %1000 }
0x141b   :  { %v1003_v55 = vmul.f32 %v1001_v13, %v2872_v26 }
0x141d   :  { %v1076_v54 = vrot.slane %v1003_v55, 4  ;;  %v2953_v27 = vsel %vm1248_vm10, %v1252_v46, %v1003_v55 }
0x141f   :  { %1077 = vrot.lane.b32.xlu1 %v1076_v54, %s2406_s15  ;;  %v1127_v54 = vrot.slane %v2943_v41, 6  ;;  %v2126_v41 = vld [vmem:[%s3132_s2 + $0x78] sm:$0xff] }
0x1420   :  { %1451 = vmatpush.msrb.mxu1 %v2126_v41 }
0x147e   :  { %v1430_v16 = vpop.permute.xlu1 %1429 }
0x147f   :  { %v2968_v20 = vadd.f32 %v1430_v16, %v1422_v53 }
0x1481   :  { %2304 = vtanh.f32 %v2968_v20 }
0x1487   :  { %v2305_v3 = vpop.eup %2304 }
0x1488   :  { %1435 = vrot.lane.b32.xlu0 %v2305_v3, %s2405_s14 }
0x1491   :  { %v1078_v23 = vpop.permute.xlu1 %1077 }
0x1492   :  { %2113 = vmatmul.msk.f32.vlgmr.msra.gmra.mxu2 %vm107_vm8, %v1078_v23 }
0x1493   :  { %1518 = vmatpush.msra.mxu2 %v2879_v38 }
0x1495   :  { %1519 = vmatpush.msra.mxu2 %v2884_v11 }
0x1497   :  { %1520 = vmatpush.msra.mxu2 %v2893_v40 }
0x1499   :  { %1521 = vmatpush.msra.mxu2 %v2898_v44 }
0x149a   :  { %2147 = vmatmul.msk.f32.vlgmr.msrb.gmra.mxu2 %vm107_vm8, %v2908_v45 }
0x149b   :  { %1798 = vmatpush.msrb.mxu2 %v2879_v38 }
0x149d   :  { %1799 = vmatpush.msrb.mxu2 %v2884_v11 }
0x149f   :  { %1800 = vmatpush.msrb.mxu2 %v2893_v40 }
0x14a1   :  { %1801 = vmatpush.msrb.mxu2 %v2898_v44 }
0x14a2   :  { %2148 = vmatmul.msk.f32.gmra.mxu2 %vm107_vm8, %v2915_v39 }
0x14fa   :  { %v1436_v24 = vpop.permute.xlu0 %1435 }
0x14fb   :  { %v1438_v25 = vmul.f32 %v1436_v24, %v1421_v6 }
0x14fd   :  { %1502 = vrot.lane.b32.xlu2 %v1438_v25, %s2406_s15  ;;  %v2125_v25 = vld [vmem:[%s3132_s2 + $0x70] sm:$0xff] }
0x14fe   :  { %1452 = vmatpush.msrb.mxu1 %v2125_v25 }
0x1515   :  { %v1098_v29 = vpop.f32.mrf.mxu2 }
0x1516   :  { %v1102_v17 = vrot.slane %v1098_v29, 2  ;;  %v2124_v29 = vld [vmem:[%s3132_s2 + $0x68] sm:$0xff] }
0x1517   :  { %1453 = vmatpush.msrb.mxu1 %v2124_v29 }
0x1518   :  { %v1104_v31 = vadd.f32 %v1102_v17, %v2759_v47  ;;  %v1552_v17 = vrot.slane %v2968_v20, 6 }
0x151a   :  { %v2114_v34 = vmul.f32 -1.442695, %v1104_v31 }
0x151c   :  { %2306 = vpow2.f32 %v2114_v34 }
0x151d   :  { %v1349_v35 = vpop.f32.mrf.mxu2 }
0x1522   :  { %v2307_v18 = vpop.eup %2306 }
0x1523   :  { %v1109_v26 = vadd.f32 1.0, %v2307_v18 }
0x1525   :  { %2308 = vrcp.f32 %v1109_v26  ;;  %v1121_v22 = vand.u32 2147483648, %v1109_v26  ;;  %v1119_v52 = vand.u32 2147483647, %v1109_v26  ;;  %vm1115_vm10 = vweird.f32 %v1109_v26  ;;  %v2992_v60 = vpop.f32.mrf.mxu2 }
0x1526   :  { %2310 = vtanh.f32 %v1104_v31 }
0x1527   :  { %v1122_v12 = vor.u32 1.1754944e-38, %v1121_v22  ;;  %vm1120_vm11 = vcmp.eq.f32.partialorder %v1119_v52, 8.507059e+37 }
0x152b   :  { %v2309_v45 = vpop.eup %2308 }
0x152c   :  { %v1111_v48 = vmul.f32 %v2309_v45, %v1109_v26  ;;  %vm1116_vm9 = vweird.f32 %v2309_v45  ;;  %v2311_v47 = vpop.eup %2310 }
0x152d   :  { %vm1117_vm7 = vmor %vm1115_vm10, %vm1116_vm9 }
0x152e   :  { %v1112_v32 = vsub.f32 1.0, %v1111_v48 }
0x1530   :  { %v1113_v39 = vmul.f32 %v2309_v45, %v1112_v32 }
0x1532   :  { %v1114_v43 = vadd.f32 %v2309_v45, %v1113_v39 }
0x1534   :  { %v1118_v51 = vsel %vm1117_vm7, %v2309_v45, %v1114_v43 }
0x1535   :  { %v1123_v49 = vsel %vm1120_vm11, %v1122_v12, %v1118_v51 }
0x1536   :  { %v1125_v56 = vsel %vm2512_vm4, %v2311_v47, %v1123_v49 }
0x1537   :  { %1131 = vrot.lane.b32.xlu0 %v1125_v56, %s2405_s14  ;;  %v1129_v8 = vmul.f32 %v1127_v54, %v1125_v56 }
0x1557   :  { %v1503_v57 = vpop.permute.xlu2 %1502 }
0x1558   :  { %2153 = vmatmul.msk.f32.vlgmr.msra.gmra.mxu2 %vm107_vm8, %v1503_v57 }
0x15a9   :  { %v1132_v58 = vpop.permute.xlu0 %1131 }
0x15aa   :  { %v1134_v59 = vmul.f32 %v1132_v58, %v1125_v56 }
0x15ac   :  { %1136 = vrot.lane.b32.xlu2 %v1134_v59, %s2406_s15 }
0x15db   :  { %v1523_v21 = vpop.f32.mrf.mxu2 }
0x15dc   :  { %v1527_v0 = vrot.slane %v1523_v21, 6 }
0x15de   :  { %v1529_v61 = vadd.f32 %v1527_v0, %v2935_v10 }
0x15e0   :  { %v2154_v19 = vmul.f32 -1.442695, %v1529_v61 }
0x15e2   :  { %2312 = vpow2.f32 %v2154_v19 }
0x15e8   :  { %v2313_v37 = vpop.eup %2312 }
0x15e9   :  { %v1534_v2 = vadd.f32 1.0, %v2313_v37 }
0x15eb   :  { %2314 = vrcp.f32 %v1534_v2  ;;  %v1546_v62 = vand.u32 2147483648, %v1534_v2  ;;  %v1544_v36 = vand.u32 2147483647, %v1534_v2  ;;  %vm1540_vm13 = vweird.f32 %v1534_v2 }
0x15ec   :  { %2316 = vtanh.f32 %v1529_v61 }
0x15ed   :  { %v1547_v9 = vor.u32 1.1754944e-38, %v1546_v62  ;;  %vm1545_vm15 = vcmp.eq.f32.partialorder %v1544_v36, 8.507059e+37 }
0x15f1   :  { %v2315_v63 = vpop.eup %2314 }
0x15f2   :  { %v1536_v5 = vmul.f32 %v2315_v63, %v1534_v2  ;;  %vm1541_vm12 = vweird.f32 %v2315_v63  ;;  %v2317_v13 = vpop.eup %2316 }
0x15f3   :  { %vm1542_vm14 = vmor %vm1540_vm13, %vm1541_vm12 }
0x15f4   :  { %v1537_v6 = vsub.f32 1.0, %v1536_v5 }
0x15f6   :  { %v1538_v30 = vmul.f32 %v2315_v63, %v1537_v6 }
0x15f8   :  { %v1539_v42 = vadd.f32 %v2315_v63, %v1538_v30 }
0x15fa   :  { %v1543_v4 = vsel %vm1542_vm14, %v2315_v63, %v1539_v42 }
0x15fb   :  { %v1548_v55 = vsel %vm1545_vm15, %v1547_v9, %v1543_v4 }
0x15fc   :  { %v1550_v46 = vsel %vm2512_vm4, %v2317_v13, %v1548_v55 }
0x15fd   :  { %1556 = vrot.lane.b32.xlu1 %v1550_v46, %s2405_s14  ;;  %v1554_v31 = vmul.f32 %v1552_v17, %v1550_v46 }
0x1606   :  { %v1137_v14 = vpop.permute.xlu2 %1136 }
0x1607   :  { %v1139_v15 = vadd.f32 %v1137_v14, %v1129_v8 }
0x1609   :  { %2318 = vtanh.f32 %v1139_v15 }
0x160f   :  { %v2319_v33 = vpop.eup %2318 }
0x1610   :  { %1142 = vrot.lane.b32.xlu1 %v2319_v33, %s2405_s14 }
0x166f   :  { %v1557_v53 = vpop.permute.xlu1 %1556 }
0x1670   :  { %v1559_v16 = vmul.f32 %v1557_v53, %v1550_v46 }
0x1672   :  { %1561 = vrot.lane.b32.xlu0 %v1559_v16, %s2406_s15 }
0x1682   :  { %v1143_v3 = vpop.permute.xlu1 %1142 }
0x1683   :  { %v1145_v23 = vmul.f32 %v1143_v3, %v1125_v56 }
0x1685   :  { %v1254_v24 = vsel %vm1250_vm3, %v2953_v27, %v1145_v23  ;;  %v2123_v27 = vld [vmem:[%s3132_s2 + $0x60] sm:$0xff] }
0x1686   :  { %1298 = vrot.lane.b32.xlu0 %v1254_v24, %s2406_s15  ;;  %1454 = vmatpush.msrb.mxu1 %v2123_v27 }
0x1688   :  { %1731 = vmatpush.msra.mxu1 %v2879_v38 }
0x168a   :  { %1732 = vmatpush.msra.mxu1 %v2884_v11 }
0x168c   :  { %1733 = vmatpush.msra.mxu1 %v2893_v40 }
0x168e   :  { %1734 = vmatpush.msra.mxu1 %v2898_v44 }
0x16e4   :  { %v1562_v34 = vpop.permute.xlu0 %1561 }
0x16e5   :  { %v1564_v35 = vadd.f32 %v1562_v34, %v1554_v31 }
0x16e7   :  { %2320 = vtanh.f32 %v1564_v35  ;;  %v1623_v37 = vrot.slane %v1564_v35, 6 }
0x16ed   :  { %v2321_v18 = vpop.eup %2320 }
0x16ee   :  { %1567 = vrot.lane.b32.xlu2 %v2321_v18, %s2405_s14 }
0x16f8   :  { %v1299_v26 = vpop.permute.xlu0 %1298 }
0x16f9   :  { %2146 = vmatmul.msk.f32.gmra.mxu1 %vm107_vm8, %v1299_v26  ;;  %2150 = vmatmul.msk.f32.gmra.mxu3 %vm107_vm8, %v1299_v26 }
0x1701   :  { %1455 = vmatmul.f32.vlgmr.msrb.gmra.mxu1 %v2404_v7 }
0x1748   :  { %v1568_v38 = vpop.permute.xlu2 %1567 }
0x1749   :  { %v1570_v20 = vmul.f32 %v1568_v38, %v1550_v46 }
0x174b   :  { %v1572_v11 = vrot.slane %v1570_v20, 2 }
0x174d   :  { %1573 = vrot.lane.b32.xlu1 %v1572_v11, %s2406_s15 }
0x177c   :  { %v3027_v40 = vpop.f32.mrf.mxu3 }
0x17bf   :  { %v1574_v45 = vpop.permute.xlu1 %1573 }
0x17c0   :  { %2155 = vmatmul.msk.f32.vlgmr.msra.gmra.mxu3 %vm107_vm8, %v1574_v45  ;;  %v1324_v45 = vpop.f32.mrf.mxu1 }
0x1843   :  { %v1594_v44 = vpop.f32.mrf.mxu3 }
0x1844   :  { %v1598_v48 = vrot.slane %v1594_v44, 4  ;;  %v3045_v44 = vpop.f32.mrf.mxu1 }
0x1846   :  { %v1600_v32 = vadd.f32 %v1598_v48, %v2935_v10  ;;  %v1325_v48 = vadd.f32 %v1324_v45, %v2927_v50 }
0x1848   :  { %v2156_v22 = vmul.f32 -1.442695, %v1600_v32 }
0x184a   :  { %2322 = vpow2.f32 %v2156_v22 }
0x1850   :  { %v2323_v39 = vpop.eup %2322 }
0x1851   :  { %v1605_v52 = vadd.f32 1.0, %v2323_v39 }
0x1853   :  { %2324 = vrcp.f32 %v1605_v52  ;;  %v1617_v51 = vand.u32 2147483648, %v1605_v52  ;;  %v1615_v49 = vand.u32 2147483647, %v1605_v52  ;;  %vm1611_vm0 = vweird.f32 %v1605_v52 }
0x1854   :  { %2326 = vtanh.f32 %v1600_v32  ;;  %v3049_v32 = vadd.f32 %v2932_v1, %v1325_v48 }
0x1855   :  { %v1618_v57 = vor.u32 1.1754944e-38, %v1617_v51  ;;  %vm1616_vm2 = vcmp.eq.f32.partialorder %v1615_v49, 8.507059e+37 }
0x1859   :  { %v2325_v7 = vpop.eup %2324 }
0x185a   :  { %v1607_v43 = vmul.f32 %v2325_v7, %v1605_v52  ;;  %vm1612_vm3 = vweird.f32 %v2325_v7  ;;  %v2327_v59 = vpop.eup %2326 }
0x185b   :  { %vm1613_vm1 = vmor %vm1611_vm0, %vm1612_vm3 }
0x185c   :  { %v1608_v12 = vsub.f32 1.0, %v1607_v43 }
0x185e   :  { %v1609_v47 = vmul.f32 %v2325_v7, %v1608_v12 }
0x1860   :  { %v1610_v56 = vadd.f32 %v2325_v7, %v1609_v47 }
0x1862   :  { %v1614_v58 = vsel %vm1613_vm1, %v2325_v7, %v1610_v56 }
0x1863   :  { %v1619_v21 = vsel %vm1616_vm2, %v1618_v57, %v1614_v58 }
0x1864   :  { %v1621_v0 = vsel %vm2512_vm4, %v2327_v59, %v1619_v21 }
0x1865   :  { %1627 = vrot.lane.b32.xlu2 %v1621_v0, %s2405_s14  ;;  %v1625_v2 = vmul.f32 %v1623_v37, %v1621_v0 }
0x18bf   :  { %v1628_v61 = vpop.permute.xlu2 %1627 }
0x18c0   :  { %v1630_v19 = vmul.f32 %v1628_v61, %v1621_v0 }
0x18c2   :  { %1632 = vrot.lane.b32.xlu0 %v1630_v19, %s2406_s15 }
0x1934   :  { %v1633_v63 = vpop.permute.xlu0 %1632 }
0x1935   :  { %v1635_v5 = vadd.f32 %v1633_v63, %v1625_v2 }
0x1937   :  { %2328 = vtanh.f32 %v1635_v5  ;;  %v1694_v17 = vrot.slane %v1635_v5, 6 }
0x193d   :  { %v2329_v6 = vpop.eup %2328 }
0x193e   :  { %1638 = vrot.lane.b32.xlu1 %v2329_v6, %s2405_s14 }
0x19b0   :  { %v1639_v62 = vpop.permute.xlu1 %1638 }
0x19b1   :  { %v1641_v30 = vmul.f32 %v1639_v62, %v1621_v0 }
0x19b3   :  { %v1643_v36 = vrot.slane %v1641_v30, 4 }
0x19b5   :  { %1644 = vrot.lane.b32.xlu2 %v1643_v36, %s2406_s15 }
0x1a0f   :  { %v1645_v42 = vpop.permute.xlu2 %1644 }
0x1a10   :  { %2157 = vmatmul.msk.f32.vlgmr.msra.gmra.mxu0 %vm107_vm8, %v1645_v42 }
0x1a8d   :  { %v1665_v9 = vpop.f32.mrf.mxu0 }
0x1a8e   :  { %v1669_v4 = vrot.slane %v1665_v9, 2 }
0x1a90   :  { %v1671_v13 = vadd.f32 %v1669_v4, %v2935_v10 }
0x1a92   :  { %v2158_v55 = vmul.f32 -1.442695, %v1671_v13 }
0x1a94   :  { %2330 = vpow2.f32 %v2158_v55 }
0x1a9a   :  { %v2331_v46 = vpop.eup %2330 }
0x1a9b   :  { %v1676_v54 = vadd.f32 1.0, %v2331_v46 }
0x1a9d   :  { %2332 = vrcp.f32 %v1676_v54  ;;  %v1688_v33 = vand.u32 2147483648, %v1676_v54  ;;  %v1686_v16 = vand.u32 2147483647, %v1676_v54  ;;  %vm1682_vm6 = vweird.f32 %v1676_v54 }
0x1a9e   :  { %2334 = vtanh.f32 %v1671_v13 }
0x1a9f   :  { %v1689_v23 = vor.u32 1.1754944e-38, %v1688_v33  ;;  %vm1687_vm10 = vcmp.eq.f32.partialorder %v1686_v16, 8.507059e+37 }
0x1aa3   :  { %v2333_v8 = vpop.eup %2332 }
0x1aa4   :  { %v1678_v14 = vmul.f32 %v2333_v8, %v1676_v54  ;;  %vm1683_vm5 = vweird.f32 %v2333_v8  ;;  %v2335_v10 = vpop.eup %2334 }
0x1aa5   :  { %vm1684_vm9 = vmor %vm1682_vm6, %vm1683_vm5 }
0x1aa6   :  { %v1679_v15 = vsub.f32 1.0, %v1678_v14 }
0x1aa8   :  { %v1680_v53 = vmul.f32 %v2333_v8, %v1679_v15 }
0x1aaa   :  { %v1681_v3 = vadd.f32 %v2333_v8, %v1680_v53 }
0x1aac   :  { %v1685_v24 = vsel %vm1684_vm9, %v2333_v8, %v1681_v3 }
0x1aad   :  { %v1690_v41 = vsel %vm1687_vm10, %v1689_v23, %v1685_v24 }
0x1aae   :  { %v1692_v25 = vsel %vm2512_vm4, %v2335_v10, %v1690_v41 }
0x1aaf   :  { %1698 = vrot.lane.b32.xlu0 %v1692_v25, %s2405_s14  ;;  %v1696_v31 = vmul.f32 %v1694_v17, %v1692_v25 }
0x1b21   :  { %v1699_v29 = vpop.permute.xlu0 %1698 }
0x1b22   :  { %v1701_v27 = vmul.f32 %v1699_v29, %v1692_v25 }
0x1b24   :  { %1703 = vrot.lane.b32.xlu1 %v1701_v27, %s2406_s15 }
0x1b96   :  { %v1704_v34 = vpop.permute.xlu1 %1703 }
0x1b97   :  { %v1706_v35 = vadd.f32 %v1704_v34, %v1696_v31 }
0x1b99   :  { %2336 = vtanh.f32 %v1706_v35  ;;  %v1762_v37 = vrot.slane %v1706_v35, 6 }
0x1b9f   :  { %v2337_v18 = vpop.eup %2336 }
0x1ba0   :  { %1709 = vrot.lane.b32.xlu2 %v2337_v18, %s2405_s14 }
0x1bfa   :  { %v1710_v26 = vpop.permute.xlu2 %1709 }
0x1bfb   :  { %v1712_v38 = vmul.f32 %v1710_v26, %v1692_v25 }
0x1bfd   :  { %v1714_v20 = vrot.slane %v1712_v38, 6 }
0x1bff   :  { %1715 = vrot.lane.b32.xlu0 %v1714_v20, %s2406_s15 }
0x1c71   :  { %v1716_v11 = vpop.permute.xlu0 %1715 }
0x1c72   :  { %2159 = vmatmul.msk.f32.vlgmr.msra.gmra.mxu1 %vm107_vm8, %v1716_v11 }
0x1cef   :  { %v1736_v22 = vpop.f32.mrf.mxu1 }
0x1cf0   :  { %v1739_v39 = vadd.f32 %v1736_v22, %v3049_v32 }
0x1cf2   :  { %v2160_v52 = vmul.f32 -1.442695, %v1739_v39 }
0x1cf4   :  { %2338 = vpow2.f32 %v2160_v52 }
0x1cfa   :  { %v2339_v7 = vpop.eup %2338 }
0x1cfb   :  { %v1744_v43 = vadd.f32 1.0, %v2339_v7 }
0x1cfd   :  { %2340 = vrcp.f32 %v1744_v43  ;;  %v1756_v49 = vand.u32 2147483648, %v1744_v43  ;;  %v1754_v57 = vand.u32 2147483647, %v1744_v43  ;;  %vm1750_vm11 = vweird.f32 %v1744_v43 }
0x1cfe   :  { %2342 = vtanh.f32 %v1739_v39 }
0x1cff   :  { %v1757_v1 = vor.u32 1.1754944e-38, %v1756_v49  ;;  %vm1755_vm13 = vcmp.eq.f32.partialorder %v1754_v57, 8.507059e+37 }
0x1d03   :  { %v2341_v12 = vpop.eup %2340 }
0x1d04   :  { %v1746_v51 = vmul.f32 %v2341_v12, %v1744_v43  ;;  %vm1751_vm7 = vweird.f32 %v2341_v12  ;;  %v2343_v59 = vpop.eup %2342 }
0x1d05   :  { %vm1752_vm12 = vmor %vm1750_vm11, %vm1751_vm7 }
0x1d06   :  { %v1747_v47 = vsub.f32 1.0, %v1746_v51 }
0x1d08   :  { %v1748_v56 = vmul.f32 %v2341_v12, %v1747_v47 }
0x1d0a   :  { %v1749_v50 = vadd.f32 %v2341_v12, %v1748_v56 }
0x1d0c   :  { %v1753_v58 = vsel %vm1752_vm12, %v2341_v12, %v1749_v50 }
0x1d0d   :  { %v1758_v21 = vsel %vm1755_vm13, %v1757_v1, %v1753_v58 }
0x1d0e   :  { %v1760_v0 = vsel %vm2512_vm4, %v2343_v59, %v1758_v21 }
0x1d0f   :  { %1766 = vrot.lane.b32.xlu1 %v1760_v0, %s2405_s14  ;;  %v1764_v2 = vmul.f32 %v1762_v37, %v1760_v0 }
0x1d81   :  { %v1767_v61 = vpop.permute.xlu1 %1766 }
0x1d82   :  { %v1769_v19 = vmul.f32 %v1767_v61, %v1760_v0  ;;  %v1374_v61 = vadd.f32 %v3027_v40, %v2992_v60 }
0x1d84   :  { %1771 = vrot.lane.b32.xlu2 %v1769_v19, %s2406_s15  ;;  %v2176_v19 = vld [vmem:[%s3133_s3 + $0x3] ss:$0 sm:$0xff] }
0x1d85   :  { %v1379_v37 = vadd.f32 %v2176_v19, %v1374_v61  ;;  %v1999_v61 = vld [vmem:[%s3134_s4 + $0x30] sm:$0xff]  ;;  %v1998_v19 = vld [vmem:[%s3134_s4 + $0x28] sm:$0xff] }
0x1dde   :  { %v1772_v63 = vpop.permute.xlu2 %1771 }
0x1ddf   :  { %v1774_v5 = vadd.f32 %v1772_v63, %v1764_v2  ;;  %v1460_v2 = vrot.slane %v3045_v44, 2 }
0x1de1   :  { %2344 = vtanh.f32 %v1774_v5  ;;  %v1832_v27 = vrot.slane %v1774_v5, 6  ;;  %v1462_v63 = vadd.f32 %v1460_v2, %v1379_v37  ;;  %v1997_v37 = vld [vmem:[%s3134_s4 + $0x20] sm:$0xff]  ;;  %v1996_v2 = vld [vmem:[%s3134_s4 + $0x18] sm:$0xff] }
0x1de2   :  { %2045 = vmatpush.msra.mxu2 %v1996_v2 }
0x1de3   :  { %v2152_v5 = vmul.f32 -1.442695, %v1462_v63 }
0x1de7   :  { %v2345_v6 = vpop.eup %2344 }
0x1de8   :  { %1777 = vrot.lane.b32.xlu0 %v2345_v6, %s2405_s14 }
0x1e5a   :  { %v1778_v62 = vpop.permute.xlu0 %1777 }
0x1e5b   :  { %v1780_v30 = vmul.f32 %v1778_v62, %v1760_v0 }
0x1e5d   :  { %1782 = vrot.lane.b32.xlu1 %v1780_v30, %s2406_s15 }
0x1ecf   :  { %v1783_v36 = vpop.permute.xlu1 %1782 }
0x1ed0   :  { %2161 = vmatmul.msk.f32.vlgmr.msrb.gmra.mxu2 %vm107_vm8, %v1783_v36 }
0x1f53   :  { %v1803_v42 = vpop.f32.mrf.mxu2 }
0x1f54   :  { %v1807_v9 = vrot.slane %v1803_v42, 6 }
0x1f56   :  { %v1809_v4 = vadd.f32 %v1807_v9, %v3049_v32 }
0x1f58   :  { %v2162_v13 = vmul.f32 -1.442695, %v1809_v4 }
0x1f5a   :  { %2346 = vpow2.f32 %v2162_v13 }
0x1f60   :  { %v2347_v55 = vpop.eup %2346 }
0x1f61   :  { %v1814_v46 = vadd.f32 1.0, %v2347_v55 }
0x1f63   :  { %2348 = vrcp.f32 %v1814_v46  ;;  %v1826_v15 = vand.u32 2147483648, %v1814_v46  ;;  %v1824_v53 = vand.u32 2147483647, %v1814_v46  ;;  %vm1820_vm15 = vweird.f32 %v1814_v46 }
0x1f64   :  { %2350 = vtanh.f32 %v1809_v4 }
0x1f65   :  { %v1827_v3 = vor.u32 1.1754944e-38, %v1826_v15  ;;  %vm1825_vm0 = vcmp.eq.f32.partialorder %v1824_v53, 8.507059e+37 }
0x1f69   :  { %v2349_v54 = vpop.eup %2348 }
0x1f6a   :  { %v1816_v8 = vmul.f32 %v2349_v54, %v1814_v46  ;;  %vm1821_vm14 = vweird.f32 %v2349_v54  ;;  %v2351_v24 = vpop.eup %2350 }
0x1f6b   :  { %vm1822_vm3 = vmor %vm1820_vm15, %vm1821_vm14 }
0x1f6c   :  { %v1817_v14 = vsub.f32 1.0, %v1816_v8 }
0x1f6e   :  { %v1818_v33 = vmul.f32 %v2349_v54, %v1817_v14 }
0x1f70   :  { %v1819_v16 = vadd.f32 %v2349_v54, %v1818_v33 }
0x1f72   :  { %v1823_v23 = vsel %vm1822_vm3, %v2349_v54, %v1819_v16 }
0x1f73   :  { %v1828_v10 = vsel %vm1825_vm0, %v1827_v3, %v1823_v23 }
0x1f74   :  { %v1830_v41 = vsel %vm2512_vm4, %v2351_v24, %v1828_v10 }
0x1f75   :  { %1836 = vrot.lane.b32.xlu2 %v1830_v41, %s2405_s14  ;;  %v1834_v17 = vmul.f32 %v1832_v27, %v1830_v41 }
0x1fcf   :  { %v1837_v25 = vpop.permute.xlu2 %1836 }
0x1fd0   :  { %v1839_v29 = vmul.f32 %v1837_v25, %v1830_v41 }
0x1fd2   :  { %1841 = vrot.lane.b32.xlu0 %v1839_v29, %s2406_s15 }
0x2044   :  { %v1842_v31 = vpop.permute.xlu0 %1841 }
0x2045   :  { %v1844_v34 = vadd.f32 %v1842_v31, %v1834_v17 }
0x2047   :  { %2352 = vtanh.f32 %v1844_v34  ;;  %v1903_v42 = vrot.slane %v1844_v34, 6 }
0x204d   :  { %v2353_v35 = vpop.eup %2352 }
0x204e   :  { %1847 = vrot.lane.b32.xlu1 %v2353_v35, %s2405_s14 }
0x20c0   :  { %v1848_v18 = vpop.permute.xlu1 %1847 }
0x20c1   :  { %v1850_v26 = vmul.f32 %v1848_v18, %v1830_v41 }
0x20c3   :  { %v1852_v38 = vrot.slane %v1850_v26, 2 }
0x20c5   :  { %1853 = vrot.lane.b32.xlu2 %v1852_v38, %s2406_s15 }
0x211f   :  { %v1854_v20 = vpop.permute.xlu2 %1853 }
0x2120   :  { %2163 = vmatmul.msk.f32.vlgmr.msrb.gmra.mxu3 %vm107_vm8, %v1854_v20 }
0x21a3   :  { %v1874_v11 = vpop.f32.mrf.mxu3 }
0x21a4   :  { %v1878_v45 = vrot.slane %v1874_v11, 4 }
0x21a6   :  { %v1880_v48 = vadd.f32 %v1878_v45, %v3049_v32 }
0x21a8   :  { %v2164_v22 = vmul.f32 -1.442695, %v1880_v48 }
0x21aa   :  { %2354 = vpow2.f32 %v2164_v22 }
0x21b0   :  { %v2355_v39 = vpop.eup %2354 }
0x21b1   :  { %v1885_v52 = vadd.f32 1.0, %v2355_v39 }
0x21b3   :  { %2356 = vrcp.f32 %v1885_v52  ;;  %v1897_v51 = vand.u32 2147483648, %v1885_v52  ;;  %v1895_v49 = vand.u32 2147483647, %v1885_v52  ;;  %vm1891_vm2 = vweird.f32 %v1885_v52 }
0x21b4   :  { %2358 = vtanh.f32 %v1880_v48 }
0x21b5   :  { %v1898_v57 = vor.u32 1.1754944e-38, %v1897_v51  ;;  %vm1896_vm6 = vcmp.eq.f32.partialorder %v1895_v49, 8.507059e+37  ;;  %2360 = vpow2.f32 %v2152_v5  ;;  %v1994_v5 = vld [vmem:[%s3134_s4 + $0x8] sm:$0xff] }
0x21b9   :  { %v2357_v7 = vpop.eup %2356 }
0x21ba   :  { %v1887_v43 = vmul.f32 %v2357_v7, %v1885_v52  ;;  %vm1892_vm1 = vweird.f32 %v2357_v7  ;;  %v2359_v1 = vpop.eup %2358 }
0x21bb   :  { %vm1893_vm5 = vmor %vm1891_vm2, %vm1892_vm1  ;;  %v2361_v6 = vpop.eup %2360 }
0x21bc   :  { %v1888_v12 = vsub.f32 1.0, %v1887_v43  ;;  %v1467_v62 = vadd.f32 1.0, %v2361_v6  ;;  %v1993_v6 = vld [vmem:[%s3134_s4] sm:$0xff] }
0x21be   :  { %v1889_v47 = vmul.f32 %v2357_v7, %v1888_v12  ;;  %2362 = vrcp.f32 %v1467_v62  ;;  %v1479_v44 = vand.u32 2147483648, %v1467_v62  ;;  %vm1473_vm10 = vweird.f32 %v1467_v62 }
0x21bf   :  { %v1477_v54 = vand.u32 2147483647, %v1467_v62 }
0x21c0   :  { %v1890_v56 = vadd.f32 %v2357_v7, %v1889_v47  ;;  %v1480_v14 = vor.u32 1.1754944e-38, %v1479_v44 }
0x21c1   :  { %vm1478_vm11 = vcmp.eq.f32.partialorder %v1477_v54, 8.507059e+37 }
0x21c2   :  { %v1894_v50 = vsel %vm1893_vm5, %v2357_v7, %v1890_v56 }
0x21c3   :  { %v1899_v58 = vsel %vm1896_vm6, %v1898_v57, %v1894_v50 }
0x21c4   :  { %v1901_v59 = vsel %vm2512_vm4, %v2359_v1, %v1899_v58  ;;  %v2363_v30 = vpop.eup %2362 }
0x21c5   :  { %1907 = vrot.lane.b32.xlu0 %v1901_v59, %s2405_s14  ;;  %v1469_v36 = vmul.f32 %v2363_v30, %v1467_v62  ;;  %v1905_v9 = vmul.f32 %v1903_v42, %v1901_v59  ;;  %vm1474_vm9 = vweird.f32 %v2363_v30 }
0x21c6   :  { %vm1475_vm7 = vmor %vm1473_vm10, %vm1474_vm9 }
0x21c7   :  { %v1470_v4 = vsub.f32 1.0, %v1469_v36 }
0x21c9   :  { %v1471_v40 = vmul.f32 %v2363_v30, %v1470_v4  ;;  %v2177_v4 = vld [vmem:[%s3135_s5] ss:$0 sm:$0xff] }
0x21cb   :  { %v1472_v55 = vadd.f32 %v2363_v30, %v1471_v40 }
0x21cd   :  { %v1476_v8 = vsel %vm1475_vm7, %v2363_v30, %v1472_v55 }
0x21ce   :  { %v1481_v15 = vsel %vm1478_vm11, %v1480_v14, %v1476_v8 }
0x2237   :  { %v1908_v21 = vpop.permute.xlu0 %1907 }
0x2238   :  { %v1910_v0 = vmul.f32 %v1908_v21, %v1901_v59 }
0x223a   :  { %1912 = vrot.lane.b32.xlu1 %v1910_v0, %s2406_s15  ;;  %v2000_v0 = vld [vmem:[%s3134_s4 + $0x38] sm:$0xff] }
0x223b   :  { %2019 = vmatpush.msrb.mxu1 %v2000_v0 }
0x223d   :  { %2020 = vmatpush.msrb.mxu1 %v1999_v61 }
0x223f   :  { %2021 = vmatpush.msrb.mxu1 %v1998_v19 }
0x2241   :  { %2022 = vmatpush.msrb.mxu1 %v1997_v37 }
0x22ac   :  { %v1913_v13 = vpop.permute.xlu1 %1912 }
0x22ad   :  { %v3078_v60 = vadd.f32 %v1913_v13, %v1905_v9 }
0x22af   :  { %2364 = vtanh.f32 %v3078_v60  ;;  %v1974_v28 = vrot.slane %v3078_v60, 6 }
0x22b0   :  { %2366 = vtanh.f32 %v1462_v63  ;;  %v1995_v63 = vld [vmem:[%s3134_s4 + $0x10] sm:$0xff]  ;;  %s2407_s4 = smov [#allocation2]  }
0x22b1   :  { %2046 = vmatpush.msra.mxu2 %v1995_v63  ;;  %s2065_s26 = sshll.u32 %s2407_s4, 4  ;;  %s2066_s26 = int_to_ptr.vmem [resolvable:$true] %s2065_s26 }
0x22b3   :  { %2047 = vmatpush.msra.mxu2 %v1994_v5 }
0x22b5   :  { %v2365_v46 = vpop.eup %2364  ;;  %2048 = vmatpush.msra.mxu2 %v1993_v6 }
0x22b6   :  { %1918 = vrot.lane.b32.xlu2 %v2365_v46, %s2405_s14  ;;  %v2367_v33 = vpop.eup %2366 }
0x22b7   :  { %v1483_v53 = vsel %vm2512_vm4, %v2367_v33, %v1481_v15 }
0x22b8   :  { %v1484_v12 = vmul.f32 0.0, %v1483_v53 }
0x22be   :  { %1486 = vrot.lane.b32.xlu2 %v1483_v53, %s2405_s14 }
0x2310   :  { %v1919_v16 = vpop.permute.xlu2 %1918 }
0x2311   :  { %v1921_v3 = vmul.f32 %v1919_v16, %v1901_v59 }
0x2313   :  { %v1923_v23 = vrot.slane %v1921_v3, 4 }
0x2315   :  { %1924 = vrot.lane.b32.xlu0 %v1923_v23, %s2406_s15 }
0x2318   :  { %v1487_v39 = vpop.permute.xlu2 %1486 }
0x2319   :  { %v1489_v52 = vmul.f32 %v1487_v39, %v1483_v53 }
0x2387   :  { %v1925_v24 = vpop.permute.xlu0 %1924 }
0x2388   :  { %2165 = vmatmul.msk.f32.vlgmr.msrb.gmra.mxu0 %vm107_vm8, %v1925_v24 }
0x2405   :  { %v1945_v10 = vpop.f32.mrf.mxu0 }
0x2406   :  { %v1949_v41 = vrot.slane %v1945_v10, 2 }
0x2408   :  { %v1951_v25 = vadd.f32 %v1949_v41, %v3049_v32 }
0x240a   :  { %v2166_v29 = vmul.f32 -1.442695, %v1951_v25 }
0x240c   :  { %2368 = vpow2.f32 %v2166_v29 }
0x2412   :  { %v2369_v27 = vpop.eup %2368 }
0x2413   :  { %v1956_v17 = vadd.f32 1.0, %v2369_v27 }
0x2415   :  { %2370 = vrcp.f32 %v1956_v17  ;;  %v1968_v18 = vand.u32 2147483648, %v1956_v17  ;;  %v1966_v38 = vand.u32 2147483647, %v1956_v17  ;;  %vm1962_vm13 = vweird.f32 %v1956_v17 }
0x2416   :  { %2372 = vtanh.f32 %v1951_v25 }
0x2417   :  { %v1969_v11 = vor.u32 1.1754944e-38, %v1968_v18  ;;  %vm1967_vm15 = vcmp.eq.f32.partialorder %v1966_v38, 8.507059e+37 }
0x241b   :  { %v2371_v31 = vpop.eup %2370 }
0x241c   :  { %v1958_v34 = vmul.f32 %v2371_v31, %v1956_v17  ;;  %vm1963_vm12 = vweird.f32 %v2371_v31  ;;  %v2373_v32 = vpop.eup %2372 }
0x241d   :  { %vm1964_vm14 = vmor %vm1962_vm13, %vm1963_vm12 }
0x241e   :  { %v1959_v35 = vsub.f32 1.0, %v1958_v34 }
0x2420   :  { %v1960_v26 = vmul.f32 %v2371_v31, %v1959_v35 }
0x2422   :  { %v1961_v20 = vadd.f32 %v2371_v31, %v1960_v26 }
0x2424   :  { %v1965_v45 = vsel %vm1964_vm14, %v2371_v31, %v1961_v20 }
0x2425   :  { %v1970_v48 = vsel %vm1967_vm15, %v1969_v11, %v1965_v45 }
0x2426   :  { %v1972_v22 = vsel %vm2512_vm4, %v2373_v32, %v1970_v48  ;;  %vm2058_vm4 = vcmask 9216  }
0x2427   :  { %1978 = vrot.lane.b32.xlu1 %v1972_v22, %s2405_s14  ;;  %v1976_v56 = vmul.f32 %v1974_v28, %v1972_v22 }
0x242f   :  { %1491 = vrot.lane.b32.xlu1 %v1489_v52, %s2406_s15 }
0x2499   :  { %v1979_v7 = vpop.permute.xlu1 %1978 }
0x249a   :  { %v1981_v43 = vmul.f32 %v1979_v7, %v1972_v22 }
0x249c   :  { %1983 = vrot.lane.b32.xlu0 %v1981_v43, %s2406_s15 }
0x24a1   :  { %v1492_v51 = vpop.permute.xlu1 %1491 }
0x24a2   :  { %v1494_v47 = vadd.f32 %v1492_v51, %v1484_v12 }
0x24a4   :  { %2374 = vtanh.f32 %v1494_v47 }
0x24aa   :  { %v2375_v49 = vpop.eup %2374 }
0x24ab   :  { %1497 = vrot.lane.b32.xlu0 %v2375_v49, %s2405_s14 }
0x250e   :  { %v1984_v57 = vpop.permute.xlu0 %1983 }
0x250f   :  { %v1986_v50 = vadd.f32 %v1984_v57, %v1976_v56 }
0x2511   :  { %2376 = vtanh.f32 %v1986_v50 }
0x2517   :  { %v2377_v1 = vpop.eup %2376 }
0x2518   :  { %1989 = vrot.lane.b32.xlu2 %v2377_v1, %s2405_s14 }
0x251d   :  { %v1498_v58 = vpop.permute.xlu0 %1497 }
0x251e   :  { %v1500_v59 = vmul.f32 %v1498_v58, %v1483_v53 }
0x2520   :  { %v2002_v21 = vrot.slane %v1500_v59, 6 }
0x2522   :  { %2003 = vrot.lane.b32.xlu2 %v2002_v21, %s2406_s15 }
0x2572   :  { %v1990_v62 = vpop.permute.xlu2 %1989 }
0x2573   :  { %v1992_v30 = vmul.f32 %v1990_v62, %v1972_v22 }
0x2575   :  { %v2028_v36 = vrot.slane %v1992_v30, 6 }
0x2577   :  { %2029 = vrot.lane.b32.xlu1 %v2028_v36, %s2406_s15 }
0x257c   :  { %v2004_v42 = vpop.permute.xlu2 %2003 }
0x257d   :  { %2167 = vmatmul.msk.f32.vlgmr.msrb.gmra.mxu1 %vm107_vm8, %v2004_v42 }
0x25e9   :  { %v2030_v9 = vpop.permute.xlu1 %2029 }
0x25ea   :  { %2168 = vmatmul.msk.f32.vlgmr.msra.gmra.mxu2 %vm107_vm8, %v2030_v9 }
0x25fa   :  { %v2024_v13 = vpop.f32.mrf.mxu1 }
0x266d   :  { %v2050_v60 = vpop.f32.mrf.mxu2 }
0x266e   :  { %v2051_v40 = vadd.f32 %v2050_v60, %v2024_v13 }
0x2670   :  { %v2057_v55 = vadd.f32 %v2177_v4, %v2051_v40 }
0x2672   :  { %2059 = vst.msk [vmem:[#allocation2] sm:$0x3] %vm2058_vm4, %v2057_v55 }
0x2673   :  { %2070 = dma.vmem_to_hbm [thread:$0]  %s2066_s26, 32, %s2068_s29, [#allocation3]  }
0x2674   :  { %2402 = dma.done.wait [#allocation3], 32  }
0x2675   :  { %2403 = vsyncadd [#allocation3], 4294967264 }
0x2676   :  { %2075 = vsyncpa [#allocation3], 1 }

</bundles_post_ra>
